<compile_context>
chip_gen: v6e
topology: v6e:2x2x1
jax: 0.10.0
libtpu: 0.0.40
codegen_flags: <defaults>
</compile_context>

<pallas_src>
import functools

import jax
import jax.numpy as jnp
from jax import lax
from jax.experimental import pallas as pl
from jax.experimental.pallas import tpu as pltpu

BN_EPS = 1e-5
_LANE = 128
_SUB = 16          # bf16 sublane tile
_CHUNK = 256       # rows of output accumulated per in-register chunk


def _round_up(x, m):
    return (x + m - 1) // m * m


def _cdiv(a, b):
    return (a + b - 1) // b


def _vmem_limit_bytes():
    """Generation-aware VMEM budget (v5e/v6e: 128 MiB phys, v7x: 64 MiB)."""
    try:
        cap = int(pltpu.get_tpu_info().vmem_capacity_bytes)
    except Exception:
        return 64 * 1024 * 1024
    return max(32 * 1024 * 1024, min(3 * cap // 4, 96 * 1024 * 1024))


def _compiler_params(vmem_limit):
    return pltpu.CompilerParams(
        dimension_semantics=("parallel",),
        vmem_limit_bytes=int(vmem_limit),
    )


def _pick_tile_h(n, h, w_pad, cin3, coutp, budget):
    """Rows of output per grid block, sized to the VMEM budget; keep >=2 blocks."""
    def need(th):
        blk_in = (th + 2) * w_pad * cin3 * 2          # bf16, double-buffered
        blk_out = th * w_pad * coutp * 2              # bf16, double-buffered
        wts = 3 * cin3 * coutp * 2 * 2
        acc = min(th * w_pad, _CHUNK) * coutp * 4     # f32 chunk accumulator
        return 2 * (blk_in + blk_out) + wts + acc + 4 * coutp * 4

    th = min(h, 64)
    while th > 1 and need(th) > budget:
        th = max(1, th // 2)
    if n * _cdiv(h, th) < 2 and h > 1:                # megacore: >= 2 grid blocks
        th = _cdiv(h, 2)
    return th


# ------------------------------ pass 1 kernels ------------------------------
def _conv_chunk(x_ref, w_ref, r0, cr, w_row):
    """3x3 conv for `cr` output rows: 3 fat matmuls (K = 3*Cin), chained f32 sum."""
    acc = jnp.dot(x_ref[0, pl.ds(r0, cr), :], w_ref[0],
                  preferred_element_type=jnp.float32)
    acc = acc + jnp.dot(x_ref[0, pl.ds(w_row + r0, cr), :], w_ref[1],
                        preferred_element_type=jnp.float32)
    acc = acc + jnp.dot(x_ref[0, pl.ds(2 * w_row + r0, cr), :], w_ref[2],
                        preferred_element_type=jnp.float32)
    return acc


def _conv_stats_kernel(x_ref, w_ref, y_ref, sum_ref, ssq_ref, *, w_row, n_rows, chunk):
    """Conv (no bias: BN cancels it) + bf16 store + per-block BN partial sums.

    x_ref : (1, (TH+2)*W_pad, 3*Cin) bf16 kx-packed, flattened halo'd rows
    w_ref : (3, 3*Cin, Coutp)        bf16 (ky-major taps)
    y_ref : (1, TH*W_pad, Coutp)     bf16 pre-BN activation
    sum_ref, ssq_ref : (1, 1, Coutp) f32
    """
    coutp = y_ref.shape[-1]
    s = jnp.zeros((1, coutp), jnp.float32)
    q = jnp.zeros((1, coutp), jnp.float32)
    r0 = 0
    while r0 < n_rows:
        cr = min(chunk, n_rows - r0)
        acc = _conv_chunk(x_ref, w_ref, r0, cr, w_row)
        yb = acc.astype(jnp.bfloat16)
        y_ref[0, pl.ds(r0, cr), :] = yb                  # single store per chunk
        yf = yb.astype(jnp.float32)
        s = s + jnp.sum(yf, axis=0, keepdims=True)
        q = q + jnp.sum(yf * yf, axis=0, keepdims=True)
        r0 += cr
    sum_ref[0] = s
    ssq_ref[0] = q


def _conv_bias_relu_kernel(x_ref, w_ref, b_ref, y_ref, *, w_row, n_rows, chunk):
    """Conv + bias + ReLU (bn=False path), bf16 output, no stats outputs."""
    r0 = 0
    while r0 < n_rows:
        cr = min(chunk, n_rows - r0)
        acc = _conv_chunk(x_ref, w_ref, r0, cr, w_row)
        y_ref[0, pl.ds(r0, cr), :] = jnp.maximum(acc + b_ref[...], 0.0
                                                 ).astype(jnp.bfloat16)
        r0 += cr


# ------------------------------ pass 2 kernel ------------------------------
def _scale_shift_relu_kernel(y_ref, scale_ref, shift_ref, o_ref):
    """Folded BN (y*scale + shift) + ReLU; bf16 in/out, f32 math (v5e-safe)."""
    y = y_ref[0].astype(jnp.float32)
    o_ref[0] = jnp.maximum(y * scale_ref[...] + shift_ref[...], 0.0
                           ).astype(jnp.bfloat16)


# ------------------------------- layer wrapper -------------------------------
def _conv3x3_bn_relu(x_nhwc, w_oihw, bias, gamma, beta, *, use_bn):
    """One UNetBlock layer. x_nhwc: (N,H,W,Cin) bf16; returns (N,H,W,Cout) bf16."""
    N, H, W, Cin = x_nhwc.shape
    Cout = w_oihw.shape[0]
    Coutp = _round_up(Cout, _LANE)          # lane-dense output channels
    Cin3 = 3 * Cin                          # kx taps packed into the contraction
    W_pad = _round_up(W, _SUB)              # sublane-aligned row stride
    vmem_limit = _vmem_limit_bytes()
    TH = _pick_tile_h(N, H, W_pad, Cin3, Coutp, vmem_limit // 2)
    num_hb = _cdiv(H, TH)
    H_pad = num_hb * TH
    NB = N * num_hb
    n_rows = TH * W_pad                     # output rows (pixels incl. W padding)
    R = (TH + 2) * W_pad                    # input rows per block (ky halo)

    # ---- wrapper glue (bf16 throughout): spatial pad, kx-pack, halo row windows ----
    xp = jnp.pad(x_nhwc, ((0, 0), (1, 1), (1, 1), (0, 0)))           # (N,H+2,W+2,Cin)
    xk = jnp.concatenate([xp[:, :, 0:W], xp[:, :, 1:W + 1], xp[:, :, 2:W + 2]],
                         axis=-1)                                     # (N,H+2,W,3Cin)
    xk = jnp.pad(xk, ((0, 0), (0, H_pad - H), (0, W_pad - W), (0, 0)))
    xwin = jnp.stack([xk[:, i * TH: i * TH + TH + 2] for i in range(num_hb)],
                     axis=1)                                          # (N,hb,TH+2,Wp,3Cin)
    xflat = xwin.reshape(NB, R, Cin3)

    # weights: (Cout,Cin,3,3) -> (ky,kx,Cin,Cout) -> (3, 3*Cin, Cout) -> pad lanes
    wk = jnp.transpose(w_oihw, (2, 3, 1, 0)).reshape(3, Cin3, Cout)
    wk = jnp.pad(wk, ((0, 0), (0, 0), (0, Coutp - Cout))).astype(jnp.bfloat16)

    x_spec = pl.BlockSpec((1, R, Cin3), lambda i: (i, 0, 0))
    w_spec = pl.BlockSpec((3, Cin3, Coutp), lambda i: (0, 0, 0))   # grid-invariant
    y_spec = pl.BlockSpec((1, n_rows, Coutp), lambda i: (i, 0, 0))
    cparams = _compiler_params(vmem_limit)

    if use_bn:
        kernel = functools.partial(_conv_stats_kernel, w_row=W_pad,
                                   n_rows=n_rows, chunk=_CHUNK)
        y, psum, pssq = pl.pallas_call(
            kernel,
            grid=(NB,),
            in_specs=[x_spec, w_spec],
            out_specs=[y_spec,
                       pl.BlockSpec((1, 1, Coutp), lambda i: (i, 0, 0)),
                       pl.BlockSpec((1, 1, Coutp), lambda i: (i, 0, 0))],
            out_shape=[jax.ShapeDtypeStruct((NB, n_rows, Coutp), jnp.bfloat16),
                       jax.ShapeDtypeStruct((NB, 1, Coutp), jnp.float32),
                       jax.ShapeDtypeStruct((NB, 1, Coutp), jnp.float32)],
            compiler_params=cparams,
        )(xflat, wk)

        # Tiny global reduction of per-block partial sums (training-mode stats).
        # Padded rows/columns contribute exactly 0, so dividing by the true count
        # N*H*W gives exact mean / E[x^2].
        m = N * H * W
        mean = jnp.sum(psum[:, 0, :], axis=0) / m
        var = jnp.maximum(jnp.sum(pssq[:, 0, :], axis=0) / m - mean * mean, 0.0)
        gp = jnp.pad(gamma.astype(jnp.float32), (0, Coutp - Cout))
        bp = jnp.pad(beta.astype(jnp.float32), (0, Coutp - Cout))
        scale = (gp * lax.rsqrt(var + BN_EPS)).reshape(1, Coutp)
        shift = (bp - mean * scale[0]).reshape(1, Coutp)

        y = pl.pallas_call(
            _scale_shift_relu_kernel,
            grid=(NB,),
            in_specs=[y_spec,
                      pl.BlockSpec((1, Coutp), lambda i: (0, 0)),
                      pl.BlockSpec((1, Coutp), lambda i: (0, 0))],
            out_specs=y_spec,
            out_shape=jax.ShapeDtypeStruct((NB, n_rows, Coutp), jnp.bfloat16),
            input_output_aliases={0: 0},        # update y in place, no 2nd HBM buffer
            compiler_params=cparams,
        )(y, scale, shift)
    else:
        b = jnp.pad(bias.astype(jnp.float32), (0, Coutp - Cout)).reshape(1, Coutp)
        kernel = functools.partial(_conv_bias_relu_kernel, w_row=W_pad,
                                   n_rows=n_rows, chunk=_CHUNK)
        y = pl.pallas_call(
            kernel,
            grid=(NB,),
            in_specs=[x_spec, w_spec, pl.BlockSpec((1, Coutp), lambda i: (0, 0))],
            out_specs=y_spec,
            out_shape=jax.ShapeDtypeStruct((NB, n_rows, Coutp), jnp.bfloat16),
            compiler_params=cparams,
        )(xflat, wk, b)

    # (NB, TH*W_pad, Coutp) -> (N, H, W, Cout): drop width/row padding + lane padding.
    out = y.reshape(N, num_hb, TH, W_pad, Coutp)[:, :, :, :W, :Cout]
    out = out.reshape(N, H_pad, W, Cout)[:, :H]
    return out                                          # bf16 NHWC


def init_unet_block_params(key, in_, out, bn=True):
    """Deterministic parameters matching UNetBlock.__init__ shapes."""
    k1, k2, k3, k4 = jax.random.split(key, 4)
    params = {
        "conv1_w": jax.random.normal(k1, (out, in_, 3, 3), jnp.float32) * 0.1,
        "conv1_b": jax.random.normal(k2, (out,), jnp.float32) * 0.1,
        "conv2_w": jax.random.normal(k3, (out, out, 3, 3), jnp.float32) * 0.1,
        "conv2_b": jax.random.normal(k4, (out,), jnp.float32) * 0.1,
    }
    if bn:
        # PyTorch BatchNorm2d defaults: weight=1, bias=0.
        params["bn1_g"] = jnp.ones((out,), jnp.float32)
        params["bn1_b"] = jnp.zeros((out,), jnp.float32)
        params["bn2_g"] = jnp.ones((out,), jnp.float32)
        params["bn2_b"] = jnp.zeros((out,), jnp.float32)
    return params


def unet_block_forward(params, x_nchw, *, bn=True):
    """Forward pass of UNetBlock. Input/output are NCHW like the PyTorch module."""
    out_c = params["conv1_w"].shape[0]
    ones = jnp.ones((out_c,), jnp.float32)
    zeros = jnp.zeros((out_c,), jnp.float32)

    x = jnp.transpose(x_nchw, (0, 2, 3, 1)).astype(jnp.bfloat16)   # NCHW -> NHWC bf16
    x = _conv3x3_bn_relu(
        x, params["conv1_w"], params["conv1_b"],
        params.get("bn1_g", ones), params.get("bn1_b", zeros), use_bn=bn,
    )
    x = _conv3x3_bn_relu(
        x, params["conv2_w"], params["conv2_b"],
        params.get("bn2_g", ones), params.get("bn2_b", zeros), use_bn=bn,
    )
    return jnp.transpose(x.astype(jnp.float32), (0, 3, 1, 2))      # NHWC -> NCHW


# ----------------------- pure-JAX reference for validation ------------------------
def _ref_layer(x_nchw, w, b, g, bt, use_bn):
    # Mirror the kernel numerics: bf16 matmul operands (f32 accumulation), the
    # pre-BN activation rounded to bf16, and bf16 layer outputs.
    xq = x_nchw.astype(jnp.bfloat16).astype(jnp.float32)
    wq = w.astype(jnp.bfloat16).astype(jnp.float32)
    y = lax.conv_general_dilated(
        xq, wq, window_strides=(1, 1), padding="SAME",
        dimension_numbers=("NCHW", "OIHW", "NCHW"),
    )
    if use_bn:
        # The conv bias is omitted here, as in the kernel: BatchNorm's mean
        # subtraction cancels a per-channel constant exactly, so the module's
        # output is unchanged.
        y = y.astype(jnp.bfloat16).astype(jnp.float32)
        mean = jnp.mean(y, axis=(0, 2, 3), keepdims=True)
        var = jnp.mean((y - mean) ** 2, axis=(0, 2, 3), keepdims=True)
        y = (y - mean) * lax.rsqrt(var + BN_EPS)
        y = y * g[None, :, None, None] + bt[None, :, None, None]
    else:
        y = y + b[None, :, None, None]
    y = jnp.maximum(y, 0.0)
    return y.astype(jnp.bfloat16).astype(jnp.float32)


def _ref_forward(params, x, bn=True):
    out_c = params["conv1_w"].shape[0]
    ones = jnp.ones((out_c,), jnp.float32)
    zeros = jnp.zeros((out_c,), jnp.float32)
    y = _ref_layer(x, params["conv1_w"], params["conv1_b"],
                   params.get("bn1_g", ones), params.get("bn1_b", zeros), bn)
    y = _ref_layer(y, params["conv2_w"], params["conv2_b"],
                   params.get("bn2_g", ones), params.get("bn2_b", zeros), bn)
    return y


if __name__ == "__main__":
    key = jax.random.PRNGKey(0)
    kx, kp = jax.random.split(key)

    N, C_IN, C_OUT, S = 2, 4, 8, 16
    x = jax.random.normal(kx, (N, C_IN, S, S), jnp.float32)

    # --- bn=True path (conv -> BN -> ReLU, twice) ---
    params = init_unet_block_params(kp, C_IN, C_OUT, bn=True)
    fwd_bn = jax.jit(functools.partial(unet_block_forward, bn=True))
    out = jax.block_until_ready(fwd_bn(params, x))
    assert out.shape == (N, C_OUT, S, S), out.shape
    ref = jax.block_until_ready(_ref_forward(params, x, bn=True))
    err = float(jnp.max(jnp.abs(out - ref)))
    assert jnp.allclose(out, ref, atol=2e-2, rtol=2e-2), err

    # --- bn=False path (conv -> ReLU, twice) ---
    params_nb = init_unet_block_params(kp, C_IN, C_OUT, bn=False)
    fwd_nb = jax.jit(functools.partial(unet_block_forward, bn=False))
    out_nb = jax.block_until_ready(fwd_nb(params_nb, x))
    ref_nb = jax.block_until_ready(_ref_forward(params_nb, x, bn=False))
    err_nb = float(jnp.max(jnp.abs(out_nb - ref_nb)))
    assert jnp.allclose(out_nb, ref_nb, atol=2e-2, rtol=2e-2), err_nb

    print("KERNEL_OK")
</pallas_src>

<mosaic_0001>
module attributes {stable_mosaic.version = 11 : i64} {
  func.func @_conv_stats_kernel(%arg0: i32, %arg1: memref<1x288x12xbf16, #tpu.memory_space<vmem>>, %arg2: memref<3x12x128xbf16, #tpu.memory_space<vmem>>, %arg3: memref<1x256x128xbf16, #tpu.memory_space<vmem>>, %arg4: memref<1x1x128xf32, #tpu.memory_space<vmem>>, %arg5: memref<1x1x128xf32, #tpu.memory_space<vmem>>) attributes {dimension_semantics = [#tpu.dimension_semantics<parallel>], iteration_bounds = array<i64: 2>, scalar_prefetch = 0 : i64, scratch_operands = 0 : i64, tpu.core_type = #tpu.core_type<tc>, window_params = [{transform_indices = @transform_0, window_bounds = array<i64: 1, 288, 12>}, {pipeline_mode = #tpu.pipeline_mode<synchronous>, transform_indices = @transform_1, window_bounds = array<i64: 3, 12, 128>}, {transform_indices = @transform_2, window_bounds = array<i64: 1, 256, 128>}, {transform_indices = @transform_3, window_bounds = array<i64: 1, 1, 128>}, {transform_indices = @transform_4, window_bounds = array<i64: 1, 1, 128>}]} {
    %cst = arith.constant 0.000000e+00 : f32
    %0 = vector.broadcast %cst : f32 to vector<1x128xf32>
    %cst_0 = arith.constant 0.000000e+00 : f32
    %1 = vector.broadcast %cst_0 : f32 to vector<1x128xf32>
    %c0 = arith.constant 0 : index
    %c0_1 = arith.constant 0 : index
    %c0_2 = arith.constant 0 : index
    %2 = vector.load %arg1[%c0, %c0_1, %c0_2] : memref<1x288x12xbf16, #tpu.memory_space<vmem>>, vector<1x256x12xbf16>
    %3 = vector.shape_cast %2 : vector<1x256x12xbf16> to vector<256x12xbf16>
    %c0_3 = arith.constant 0 : index
    %c0_4 = arith.constant 0 : index
    %c0_5 = arith.constant 0 : index
    %4 = vector.load %arg2[%c0_3, %c0_4, %c0_5] : memref<3x12x128xbf16, #tpu.memory_space<vmem>>, vector<1x12x128xbf16>
    %5 = vector.shape_cast %4 : vector<1x12x128xbf16> to vector<12x128xbf16>
    %cst_6 = arith.constant dense<0.000000e+00> : vector<256x128xf32>
    %6 = tpu.matmul %3, %5, %cst_6 {dimension_numbers = #tpu.dot_dimension_numbers<[1], [0], [0], [1], [0, 0, 1, 1], [], []>} : vector<256x12xbf16>, vector<12x128xbf16>, vector<256x128xf32> -> vector<256x128xf32>
    %c0_7 = arith.constant 0 : index
    %c16 = arith.constant 16 : index
    %c0_8 = arith.constant 0 : index
    %7 = vector.load %arg1[%c0_7, %c16, %c0_8] : memref<1x288x12xbf16, #tpu.memory_space<vmem>>, vector<1x256x12xbf16>
    %8 = vector.shape_cast %7 : vector<1x256x12xbf16> to vector<256x12xbf16>
    %c1 = arith.constant 1 : index
    %c0_9 = arith.constant 0 : index
    %c0_10 = arith.constant 0 : index
    %9 = vector.load %arg2[%c1, %c0_9, %c0_10] : memref<3x12x128xbf16, #tpu.memory_space<vmem>>, vector<1x12x128xbf16>
    %10 = vector.shape_cast %9 : vector<1x12x128xbf16> to vector<12x128xbf16>
    %cst_11 = arith.constant dense<0.000000e+00> : vector<256x128xf32>
    %11 = tpu.matmul %8, %10, %cst_11 {dimension_numbers = #tpu.dot_dimension_numbers<[1], [0], [0], [1], [0, 0, 1, 1], [], []>} : vector<256x12xbf16>, vector<12x128xbf16>, vector<256x128xf32> -> vector<256x128xf32>
    %12 = arith.addf %6, %11 : vector<256x128xf32>
    %c0_12 = arith.constant 0 : index
    %c32 = arith.constant 32 : index
    %c0_13 = arith.constant 0 : index
    %13 = vector.load %arg1[%c0_12, %c32, %c0_13] : memref<1x288x12xbf16, #tpu.memory_space<vmem>>, vector<1x256x12xbf16>
    %14 = vector.shape_cast %13 : vector<1x256x12xbf16> to vector<256x12xbf16>
    %c2 = arith.constant 2 : index
    %c0_14 = arith.constant 0 : index
    %c0_15 = arith.constant 0 : index
    %15 = vector.load %arg2[%c2, %c0_14, %c0_15] : memref<3x12x128xbf16, #tpu.memory_space<vmem>>, vector<1x12x128xbf16>
    %16 = vector.shape_cast %15 : vector<1x12x128xbf16> to vector<12x128xbf16>
    %cst_16 = arith.constant dense<0.000000e+00> : vector<256x128xf32>
    %17 = tpu.matmul %14, %16, %cst_16 {dimension_numbers = #tpu.dot_dimension_numbers<[1], [0], [0], [1], [0, 0, 1, 1], [], []>} : vector<256x12xbf16>, vector<12x128xbf16>, vector<256x128xf32> -> vector<256x128xf32>
    %18 = arith.addf %12, %17 : vector<256x128xf32>
    %19 = arith.truncf %18 : vector<256x128xf32> to vector<256x128xbf16>
    %c0_17 = arith.constant 0 : index
    %c0_18 = arith.constant 0 : index
    %c0_19 = arith.constant 0 : index
    %20 = vector.load %arg3[%c0_17, %c0_18, %c0_19] : memref<1x256x128xbf16, #tpu.memory_space<vmem>>, vector<1x256x128xbf16>
    %21 = vector.shape_cast %20 : vector<1x256x128xbf16> to vector<256x128xbf16>
    %22 = vector.shape_cast %19 : vector<256x128xbf16> to vector<1x256x128xbf16>
    tpu.vector_store %arg3[%c0_17, %c0_18, %c0_19], %22 {strides = array<i32>} : memref<1x256x128xbf16, #tpu.memory_space<vmem>>, vector<1x256x128xbf16>,
    %23 = arith.extf %19 : vector<256x128xbf16> to vector<256x128xf32>
    %cst_20 = arith.constant dense<0.000000e+00> : vector<128xf32>
    %24 = vector.multi_reduction <add>, %23, %cst_20 [0] : vector<256x128xf32> to vector<128xf32>
    %25 = vector.shape_cast %24 : vector<128xf32> to vector<1x128xf32>
    %26 = arith.addf %0, %25 : vector<1x128xf32>
    %27 = arith.mulf %23, %23 : vector<256x128xf32>
    %cst_21 = arith.constant dense<0.000000e+00> : vector<128xf32>
    %28 = vector.multi_reduction <add>, %27, %cst_21 [0] : vector<256x128xf32> to vector<128xf32>
    %29 = vector.shape_cast %28 : vector<128xf32> to vector<1x128xf32>
    %30 = arith.addf %1, %29 : vector<1x128xf32>
    %c0_22 = arith.constant 0 : index
    %c0_23 = arith.constant 0 : index
    %c0_24 = arith.constant 0 : index
    %31 = vector.load %arg4[%c0_22, %c0_23, %c0_24] : memref<1x1x128xf32, #tpu.memory_space<vmem>>, vector<1x1x128xf32>
    %32 = vector.shape_cast %31 : vector<1x1x128xf32> to vector<1x128xf32>
    %33 = vector.shape_cast %26 : vector<1x128xf32> to vector<1x1x128xf32>
    tpu.vector_store %arg4[%c0_22, %c0_23, %c0_24], %33 {strides = array<i32>} : memref<1x1x128xf32, #tpu.memory_space<vmem>>, vector<1x1x128xf32>,
    %c0_25 = arith.constant 0 : index
    %c0_26 = arith.constant 0 : index
    %c0_27 = arith.constant 0 : index
    %34 = vector.load %arg5[%c0_25, %c0_26, %c0_27] : memref<1x1x128xf32, #tpu.memory_space<vmem>>, vector<1x1x128xf32>
    %35 = vector.shape_cast %34 : vector<1x1x128xf32> to vector<1x128xf32>
    %36 = vector.shape_cast %30 : vector<1x128xf32> to vector<1x1x128xf32>
    tpu.vector_store %arg5[%c0_25, %c0_26, %c0_27], %36 {strides = array<i32>} : memref<1x1x128xf32, #tpu.memory_space<vmem>>, vector<1x1x128xf32>,
    return
  }
  func.func @transform_0(%arg0: i32) -> (i32, i32, i32) {
    %c0_i32 = arith.constant 0 : i32
    %c0_i32_0 = arith.constant 0 : i32
    %c0_i32_1 = arith.constant 0 : i32
    return %arg0, %c0_i32, %c0_i32_0 : i32, i32, i32
  }
  func.func @transform_1(%arg0: i32) -> (i32, i32, i32) {
    %c0_i32 = arith.constant 0 : i32
    %c0_i32_0 = arith.constant 0 : i32
    %c0_i32_1 = arith.constant 0 : i32
    %c0_i32_2 = arith.constant 0 : i32
    return %c0_i32, %c0_i32_0, %c0_i32_1 : i32, i32, i32
  }
  func.func @transform_2(%arg0: i32) -> (i32, i32, i32) {
    %c0_i32 = arith.constant 0 : i32
    %c0_i32_0 = arith.constant 0 : i32
    %c0_i32_1 = arith.constant 0 : i32
    return %arg0, %c0_i32, %c0_i32_0 : i32, i32, i32
  }
  func.func @transform_3(%arg0: i32) -> (i32, i32, i32) {
    %c0_i32 = arith.constant 0 : i32
    %c0_i32_0 = arith.constant 0 : i32
    %c0_i32_1 = arith.constant 0 : i32
    return %arg0, %c0_i32, %c0_i32_0 : i32, i32, i32
  }
  func.func @transform_4(%arg0: i32) -> (i32, i32, i32) {
    %c0_i32 = arith.constant 0 : i32
    %c0_i32_0 = arith.constant 0 : i32
    %c0_i32_1 = arith.constant 0 : i32
    return %arg0, %c0_i32, %c0_i32_0 : i32, i32, i32
  }
}

module attributes {stable_mosaic.version = 11 : i64} {
  func.func @_scale_shift_relu_kernel(%arg0: i32, %arg1: memref<1x256x128xbf16, #tpu.memory_space<vmem>>, %arg2: memref<1x128xf32, #tpu.memory_space<vmem>>, %arg3: memref<1x128xf32, #tpu.memory_space<vmem>>, %arg4: memref<1x256x128xbf16, #tpu.memory_space<vmem>>) attributes {dimension_semantics = [#tpu.dimension_semantics<parallel>], iteration_bounds = array<i64: 2>, scalar_prefetch = 0 : i64, scratch_operands = 0 : i64, tpu.core_type = #tpu.core_type<tc>, window_params = [{transform_indices = @transform_0, window_bounds = array<i64: 1, 256, 128>}, {pipeline_mode = #tpu.pipeline_mode<synchronous>, transform_indices = @transform_1, window_bounds = array<i64: 1, 128>}, {pipeline_mode = #tpu.pipeline_mode<synchronous>, transform_indices = @transform_2, window_bounds = array<i64: 1, 128>}, {transform_indices = @transform_3, window_bounds = array<i64: 1, 256, 128>}]} {
    %c0 = arith.constant 0 : index
    %c0_0 = arith.constant 0 : index
    %c0_1 = arith.constant 0 : index
    %0 = vector.load %arg1[%c0, %c0_0, %c0_1] : memref<1x256x128xbf16, #tpu.memory_space<vmem>>, vector<1x256x128xbf16>
    %1 = vector.shape_cast %0 : vector<1x256x128xbf16> to vector<256x128xbf16>
    %2 = arith.extf %1 : vector<256x128xbf16> to vector<256x128xf32>
    %c0_2 = arith.constant 0 : index
    %c0_3 = arith.constant 0 : index
    %3 = vector.load %arg2[%c0_2, %c0_3] : memref<1x128xf32, #tpu.memory_space<vmem>>, vector<1x128xf32>
    %4 = vector.broadcast %3 : vector<1x128xf32> to vector<256x128xf32>
    %5 = arith.mulf %2, %4 : vector<256x128xf32>
    %c0_4 = arith.constant 0 : index
    %c0_5 = arith.constant 0 : index
    %6 = vector.load %arg3[%c0_4, %c0_5] : memref<1x128xf32, #tpu.memory_space<vmem>>, vector<1x128xf32>
    %7 = vector.broadcast %6 : vector<1x128xf32> to vector<256x128xf32>
    %8 = arith.addf %5, %7 : vector<256x128xf32>
    %cst = arith.constant 0.000000e+00 : f32
    %9 = vector.broadcast %cst : f32 to vector<256x128xf32>
    %10 = arith.maximumf %8, %9 : vector<256x128xf32>
    %11 = arith.truncf %10 : vector<256x128xf32> to vector<256x128xbf16>
    %c0_6 = arith.constant 0 : index
    %c0_7 = arith.constant 0 : index
    %c0_8 = arith.constant 0 : index
    %12 = vector.load %arg4[%c0_6, %c0_7, %c0_8] : memref<1x256x128xbf16, #tpu.memory_space<vmem>>, vector<1x256x128xbf16>
    %13 = vector.shape_cast %12 : vector<1x256x128xbf16> to vector<256x128xbf16>
    %14 = vector.shape_cast %11 : vector<256x128xbf16> to vector<1x256x128xbf16>
    tpu.vector_store %arg4[%c0_6, %c0_7, %c0_8], %14 {strides = array<i32>} : memref<1x256x128xbf16, #tpu.memory_space<vmem>>, vector<1x256x128xbf16>,
    return
  }
  func.func @transform_0(%arg0: i32) -> (i32, i32, i32) {
    %c0_i32 = arith.constant 0 : i32
    %c0_i32_0 = arith.constant 0 : i32
    %c0_i32_1 = arith.constant 0 : i32
    return %arg0, %c0_i32, %c0_i32_0 : i32, i32, i32
  }
  func.func @transform_1(%arg0: i32) -> (i32, i32) {
    %c0_i32 = arith.constant 0 : i32
    %c0_i32_0 = arith.constant 0 : i32
    %c0_i32_1 = arith.constant 0 : i32
    return %c0_i32, %c0_i32_0 : i32, i32
  }
  func.func @transform_2(%arg0: i32) -> (i32, i32) {
    %c0_i32 = arith.constant 0 : i32
    %c0_i32_0 = arith.constant 0 : i32
    %c0_i32_1 = arith.constant 0 : i32
    return %c0_i32, %c0_i32_0 : i32, i32
  }
  func.func @transform_3(%arg0: i32) -> (i32, i32, i32) {
    %c0_i32 = arith.constant 0 : i32
    %c0_i32_0 = arith.constant 0 : i32
    %c0_i32_1 = arith.constant 0 : i32
    return %arg0, %c0_i32, %c0_i32_0 : i32, i32, i32
  }
}

module attributes {stable_mosaic.version = 11 : i64} {
  func.func @_conv_stats_kernel(%arg0: i32, %arg1: memref<1x288x24xbf16, #tpu.memory_space<vmem>>, %arg2: memref<3x24x128xbf16, #tpu.memory_space<vmem>>, %arg3: memref<1x256x128xbf16, #tpu.memory_space<vmem>>, %arg4: memref<1x1x128xf32, #tpu.memory_space<vmem>>, %arg5: memref<1x1x128xf32, #tpu.memory_space<vmem>>) attributes {dimension_semantics = [#tpu.dimension_semantics<parallel>], iteration_bounds = array<i64: 2>, scalar_prefetch = 0 : i64, scratch_operands = 0 : i64, tpu.core_type = #tpu.core_type<tc>, window_params = [{transform_indices = @transform_0, window_bounds = array<i64: 1, 288, 24>}, {pipeline_mode = #tpu.pipeline_mode<synchronous>, transform_indices = @transform_1, window_bounds = array<i64: 3, 24, 128>}, {transform_indices = @transform_2, window_bounds = array<i64: 1, 256, 128>}, {transform_indices = @transform_3, window_bounds = array<i64: 1, 1, 128>}, {transform_indices = @transform_4, window_bounds = array<i64: 1, 1, 128>}]} {
    %cst = arith.constant 0.000000e+00 : f32
    %0 = vector.broadcast %cst : f32 to vector<1x128xf32>
    %cst_0 = arith.constant 0.000000e+00 : f32
    %1 = vector.broadcast %cst_0 : f32 to vector<1x128xf32>
    %c0 = arith.constant 0 : index
    %c0_1 = arith.constant 0 : index
    %c0_2 = arith.constant 0 : index
    %2 = vector.load %arg1[%c0, %c0_1, %c0_2] : memref<1x288x24xbf16, #tpu.memory_space<vmem>>, vector<1x256x24xbf16>
    %3 = vector.shape_cast %2 : vector<1x256x24xbf16> to vector<256x24xbf16>
    %c0_3 = arith.constant 0 : index
    %c0_4 = arith.constant 0 : index
    %c0_5 = arith.constant 0 : index
    %4 = vector.load %arg2[%c0_3, %c0_4, %c0_5] : memref<3x24x128xbf16, #tpu.memory_space<vmem>>, vector<1x24x128xbf16>
    %5 = vector.shape_cast %4 : vector<1x24x128xbf16> to vector<24x128xbf16>
    %cst_6 = arith.constant dense<0.000000e+00> : vector<256x128xf32>
    %6 = tpu.matmul %3, %5, %cst_6 {dimension_numbers = #tpu.dot_dimension_numbers<[1], [0], [0], [1], [0, 0, 1, 1], [], []>} : vector<256x24xbf16>, vector<24x128xbf16>, vector<256x128xf32> -> vector<256x128xf32>
    %c0_7 = arith.constant 0 : index
    %c16 = arith.constant 16 : index
    %c0_8 = arith.constant 0 : index
    %7 = vector.load %arg1[%c0_7, %c16, %c0_8] : memref<1x288x24xbf16, #tpu.memory_space<vmem>>, vector<1x256x24xbf16>
    %8 = vector.shape_cast %7 : vector<1x256x24xbf16> to vector<256x24xbf16>
    %c1 = arith.constant 1 : index
    %c0_9 = arith.constant 0 : index
    %c0_10 = arith.constant 0 : index
    %9 = vector.load %arg2[%c1, %c0_9, %c0_10] : memref<3x24x128xbf16, #tpu.memory_space<vmem>>, vector<1x24x128xbf16>
    %10 = vector.shape_cast %9 : vector<1x24x128xbf16> to vector<24x128xbf16>
    %cst_11 = arith.constant dense<0.000000e+00> : vector<256x128xf32>
    %11 = tpu.matmul %8, %10, %cst_11 {dimension_numbers = #tpu.dot_dimension_numbers<[1], [0], [0], [1], [0, 0, 1, 1], [], []>} : vector<256x24xbf16>, vector<24x128xbf16>, vector<256x128xf32> -> vector<256x128xf32>
    %12 = arith.addf %6, %11 : vector<256x128xf32>
    %c0_12 = arith.constant 0 : index
    %c32 = arith.constant 32 : index
    %c0_13 = arith.constant 0 : index
    %13 = vector.load %arg1[%c0_12, %c32, %c0_13] : memref<1x288x24xbf16, #tpu.memory_space<vmem>>, vector<1x256x24xbf16>
    %14 = vector.shape_cast %13 : vector<1x256x24xbf16> to vector<256x24xbf16>
    %c2 = arith.constant 2 : index
    %c0_14 = arith.constant 0 : index
    %c0_15 = arith.constant 0 : index
    %15 = vector.load %arg2[%c2, %c0_14, %c0_15] : memref<3x24x128xbf16, #tpu.memory_space<vmem>>, vector<1x24x128xbf16>
    %16 = vector.shape_cast %15 : vector<1x24x128xbf16> to vector<24x128xbf16>
    %cst_16 = arith.constant dense<0.000000e+00> : vector<256x128xf32>
    %17 = tpu.matmul %14, %16, %cst_16 {dimension_numbers = #tpu.dot_dimension_numbers<[1], [0], [0], [1], [0, 0, 1, 1], [], []>} : vector<256x24xbf16>, vector<24x128xbf16>, vector<256x128xf32> -> vector<256x128xf32>
    %18 = arith.addf %12, %17 : vector<256x128xf32>
    %19 = arith.truncf %18 : vector<256x128xf32> to vector<256x128xbf16>
    %c0_17 = arith.constant 0 : index
    %c0_18 = arith.constant 0 : index
    %c0_19 = arith.constant 0 : index
    %20 = vector.load %arg3[%c0_17, %c0_18, %c0_19] : memref<1x256x128xbf16, #tpu.memory_space<vmem>>, vector<1x256x128xbf16>
    %21 = vector.shape_cast %20 : vector<1x256x128xbf16> to vector<256x128xbf16>
    %22 = vector.shape_cast %19 : vector<256x128xbf16> to vector<1x256x128xbf16>
    tpu.vector_store %arg3[%c0_17, %c0_18, %c0_19], %22 {strides = array<i32>} : memref<1x256x128xbf16, #tpu.memory_space<vmem>>, vector<1x256x128xbf16>,
    %23 = arith.extf %19 : vector<256x128xbf16> to vector<256x128xf32>
    %cst_20 = arith.constant dense<0.000000e+00> : vector<128xf32>
    %24 = vector.multi_reduction <add>, %23, %cst_20 [0] : vector<256x128xf32> to vector<128xf32>
    %25 = vector.shape_cast %24 : vector<128xf32> to vector<1x128xf32>
    %26 = arith.addf %0, %25 : vector<1x128xf32>
    %27 = arith.mulf %23, %23 : vector<256x128xf32>
    %cst_21 = arith.constant dense<0.000000e+00> : vector<128xf32>
    %28 = vector.multi_reduction <add>, %27, %cst_21 [0] : vector<256x128xf32> to vector<128xf32>
    %29 = vector.shape_cast %28 : vector<128xf32> to vector<1x128xf32>
    %30 = arith.addf %1, %29 : vector<1x128xf32>
    %c0_22 = arith.constant 0 : index
    %c0_23 = arith.constant 0 : index
    %c0_24 = arith.constant 0 : index
    %31 = vector.load %arg4[%c0_22, %c0_23, %c0_24] : memref<1x1x128xf32, #tpu.memory_space<vmem>>, vector<1x1x128xf32>
    %32 = vector.shape_cast %31 : vector<1x1x128xf32> to vector<1x128xf32>
    %33 = vector.shape_cast %26 : vector<1x128xf32> to vector<1x1x128xf32>
    tpu.vector_store %arg4[%c0_22, %c0_23, %c0_24], %33 {strides = array<i32>} : memref<1x1x128xf32, #tpu.memory_space<vmem>>, vector<1x1x128xf32>,
    %c0_25 = arith.constant 0 : index
    %c0_26 = arith.constant 0 : index
    %c0_27 = arith.constant 0 : index
    %34 = vector.load %arg5[%c0_25, %c0_26, %c0_27] : memref<1x1x128xf32, #tpu.memory_space<vmem>>, vector<1x1x128xf32>
    %35 = vector.shape_cast %34 : vector<1x1x128xf32> to vector<1x128xf32>
    %36 = vector.shape_cast %30 : vector<1x128xf32> to vector<1x1x128xf32>
    tpu.vector_store %arg5[%c0_25, %c0_26, %c0_27], %36 {strides = array<i32>} : memref<1x1x128xf32, #tpu.memory_space<vmem>>, vector<1x1x128xf32>,
    return
  }
  func.func @transform_0(%arg0: i32) -> (i32, i32, i32) {
    %c0_i32 = arith.constant 0 : i32
    %c0_i32_0 = arith.constant 0 : i32
    %c0_i32_1 = arith.constant 0 : i32
    return %arg0, %c0_i32, %c0_i32_0 : i32, i32, i32
  }
  func.func @transform_1(%arg0: i32) -> (i32, i32, i32) {
    %c0_i32 = arith.constant 0 : i32
    %c0_i32_0 = arith.constant 0 : i32
    %c0_i32_1 = arith.constant 0 : i32
    %c0_i32_2 = arith.constant 0 : i32
    return %c0_i32, %c0_i32_0, %c0_i32_1 : i32, i32, i32
  }
  func.func @transform_2(%arg0: i32) -> (i32, i32, i32) {
    %c0_i32 = arith.constant 0 : i32
    %c0_i32_0 = arith.constant 0 : i32
    %c0_i32_1 = arith.constant 0 : i32
    return %arg0, %c0_i32, %c0_i32_0 : i32, i32, i32
  }
  func.func @transform_3(%arg0: i32) -> (i32, i32, i32) {
    %c0_i32 = arith.constant 0 : i32
    %c0_i32_0 = arith.constant 0 : i32
    %c0_i32_1 = arith.constant 0 : i32
    return %arg0, %c0_i32, %c0_i32_0 : i32, i32, i32
  }
  func.func @transform_4(%arg0: i32) -> (i32, i32, i32) {
    %c0_i32 = arith.constant 0 : i32
    %c0_i32_0 = arith.constant 0 : i32
    %c0_i32_1 = arith.constant 0 : i32
    return %arg0, %c0_i32, %c0_i32_0 : i32, i32, i32
  }
}

</mosaic_0001>

<bundles_post_ra>
// kernel: unet_block_forward.5
= control target key start
LH: loop header
LB: loop body
LE: loop exit
PB: predicated region body
PF: predicated region fallthrough
CT: control target
= control target key end

     0   :  { %s849_s12 = smov 0   ;;  %s991_s0 = inlined_call_operand.vmem [shape: bf16[2,256,128], index: 0, kind: input, shape index: {}, may-alias: {0,3}]   ;;  %s992_s1 = inlined_call_operand.vmem [shape: f32[1,128], index: 1, kind: input, shape index: {}]   ;;  %s993_s2 = inlined_call_operand.vmem [shape: f32[1,128], index: 2, kind: input, shape index: {}]   ;;  %s994_s3 = inlined_call_operand.vmem [shape: bf16[2,256,128], index: 3, kind: output, shape index: {}, may-alias: {0,3}]  }
   0x1 LB: > { %s560_s13 = sadd.s32 4294967295, %s827_s12   ;;  %p564_p0 = scmp.ge.s32.totalorder %s827_s12, 1  ;;  %s827_s12 = sphi %s849_s12, %s13_s12  }
   0x2   : > { %p137_p1 = scmp.lt.s32.totalorder %s827_s12, 3 }
   0x4   : > { %p138_p2 = pnand %p564_p0, %p137_p1 }
   0x5   : > { %p161_p3 = scmp.lt.s32.totalorder (!%p138_p2), %s560_s13, 1 }
   0x6   : > { %141 = sbr.rel (%p138_p2) target bundleno = 55 (0x37), region = 32 }
   0xb   : > { %s996_s13 = smov (!%p161_p3, %s560_s13), 1  ;;  %v569_v40 = vld [vmem:[%s992_s1] ss:$0 sm:$0xff] }
   0xc   : > { %s605_s14 = sshll.u32 %s996_s13, 7 }
   0xd   : > { %s865_s17 = scalar_lea.vmem %s991_s0, %s605_s14  ;;  %s932_s24 = scalar_lea.vmem %s994_s3, %s605_s14 }
   0xe   : > { %v640_v0 = vld [vmem:[%s865_s17] sm:$0xff]   ;;  %v783_v1 = vld [vmem:[%s865_s17 + $0x8] sm:$0xff]   ;;  %v784_v2 = vld [vmem:[%s865_s17 + $0x10] sm:$0xff]  }
   0xf   : > { %v641_v3 = vunpack.c.l.bf16 %v640_v0  ;;  %v642_v4 = vunpack.c.h.bf16 %v640_v0  ;;  %v645_v5 = vunpack.c.l.bf16 %v783_v1  ;;  %v646_v6 = vunpack.c.h.bf16 %v783_v1  ;;  %v785_v7 = vld [vmem:[%s865_s17 + $0x18] sm:$0xff]   ;;  %v786_v8 = vld [vmem:[%s865_s17 + $0x20] sm:$0xff]   ;;  %v787_v9 = vld [vmem:[%s865_s17 + $0x28] sm:$0xff]  }
  0x10   : > { %v649_v10 = vunpack.c.l.bf16 %v784_v2  ;;  %v650_v11 = vunpack.c.h.bf16 %v784_v2  ;;  %v653_v12 = vunpack.c.l.bf16 %v785_v7  ;;  %v654_v13 = vunpack.c.h.bf16 %v785_v7  ;;  %v788_v14 = vld [vmem:[%s865_s17 + $0x30] sm:$0xff]   ;;  %v789_v15 = vld [vmem:[%s865_s17 + $0x38] sm:$0xff]   ;;  %v790_v16 = vld [vmem:[%s865_s17 + $0x40] sm:$0xff]  }
  0x11   : > { %v657_v17 = vunpack.c.l.bf16 %v786_v8  ;;  %v658_v18 = vunpack.c.h.bf16 %v786_v8  ;;  %v661_v19 = vunpack.c.l.bf16 %v787_v9  ;;  %v662_v20 = vunpack.c.h.bf16 %v787_v9  ;;  %v791_v21 = vld [vmem:[%s865_s17 + $0x48] sm:$0xff]   ;;  %v792_v22 = vld [vmem:[%s865_s17 + $0x50] sm:$0xff]   ;;  %v793_v23 = vld [vmem:[%s865_s17 + $0x58] sm:$0xff]  }
  0x12   : > { %v665_v24 = vunpack.c.l.bf16 %v788_v14  ;;  %v666_v25 = vunpack.c.h.bf16 %v788_v14  ;;  %v669_v26 = vunpack.c.l.bf16 %v789_v15  ;;  %v670_v27 = vunpack.c.h.bf16 %v789_v15  ;;  %v794_v28 = vld [vmem:[%s865_s17 + $0x60] sm:$0xff]   ;;  %v795_v29 = vld [vmem:[%s865_s17 + $0x68] sm:$0xff]   ;;  %v796_v34 = vld [vmem:[%s865_s17 + $0x70] sm:$0xff]  }
  0x13   : > { %v673_v30 = vunpack.c.l.bf16 %v790_v16  ;;  %v674_v31 = vunpack.c.h.bf16 %v790_v16  ;;  %v677_v32 = vunpack.c.l.bf16 %v791_v21  ;;  %v678_v33 = vunpack.c.h.bf16 %v791_v21  ;;  %v797_v35 = vld [vmem:[%s865_s17 + $0x78] sm:$0xff]   ;;  %v901_v9 = vld [vmem:[%s993_s2] ss:$0 sm:$0xff] }
  0x14   : > { %v681_v36 = vunpack.c.l.bf16 %v792_v22  ;;  %v682_v37 = vunpack.c.h.bf16 %v792_v22  ;;  %v685_v38 = vunpack.c.l.bf16 %v793_v23  ;;  %v686_v39 = vunpack.c.h.bf16 %v793_v23 }
  0x15   : > { %v689_v41 = vunpack.c.l.bf16 %v794_v28  ;;  %v690_v42 = vunpack.c.h.bf16 %v794_v28  ;;  %v693_v43 = vunpack.c.l.bf16 %v795_v29  ;;  %v694_v44 = vunpack.c.h.bf16 %v795_v29 }
  0x16   : > { %v697_v45 = vunpack.c.l.bf16 %v796_v34  ;;  %v698_v46 = vunpack.c.h.bf16 %v796_v34  ;;  %v701_v47 = vunpack.c.l.bf16 %v797_v35  ;;  %v702_v48 = vunpack.c.h.bf16 %v797_v35 }
  0x17   : > { %v242_v49 = vmul.f32 %v641_v3, %v569_v40  ;;  %v243_v50 = vmul.f32 %v642_v4, %v569_v40  ;;  %v244_v51 = vmul.f32 %v645_v5, %v569_v40  ;;  %v245_v52 = vmul.f32 %v646_v6, %v569_v40 }
  0x18   : > { %v246_v53 = vmul.f32 %v649_v10, %v569_v40  ;;  %v247_v54 = vmul.f32 %v650_v11, %v569_v40  ;;  %v248_v55 = vmul.f32 %v653_v12, %v569_v40  ;;  %v249_v56 = vmul.f32 %v654_v13, %v569_v40 }
  0x19   : > { %v250_v57 = vmul.f32 %v657_v17, %v569_v40  ;;  %v251_v58 = vmul.f32 %v658_v18, %v569_v40  ;;  %v252_v59 = vmul.f32 %v661_v19, %v569_v40  ;;  %v253_v60 = vmul.f32 %v662_v20, %v569_v40 }
  0x1a   : > { %v254_v61 = vmul.f32 %v665_v24, %v569_v40  ;;  %v255_v62 = vmul.f32 %v666_v25, %v569_v40  ;;  %v256_v63 = vmul.f32 %v669_v26, %v569_v40  ;;  %v257_v0 = vmul.f32 %v670_v27, %v569_v40 }
  0x1b   : > { %v258_v1 = vmul.f32 %v673_v30, %v569_v40  ;;  %v259_v2 = vmul.f32 %v674_v31, %v569_v40  ;;  %v886_v7 = vmul.f32 %v677_v32, %v569_v40  ;;  %v888_v3 = vmul.f32 %v678_v33, %v569_v40 }
  0x1c   : > { %v890_v4 = vmul.f32 %v681_v36, %v569_v40  ;;  %v892_v5 = vmul.f32 %v682_v37, %v569_v40  ;;  %v894_v6 = vmul.f32 %v685_v38, %v569_v40  ;;  %v896_v8 = vmul.f32 %v686_v39, %v569_v40 }
  0x1d   : > { %v903_v10 = vmul.f32 %v689_v41, %v569_v40  ;;  %v905_v11 = vmul.f32 %v690_v42, %v569_v40  ;;  %v907_v12 = vmul.f32 %v693_v43, %v569_v40  ;;  %v909_v13 = vmul.f32 %v694_v44, %v569_v40 }
  0x1e   : > { %v911_v14 = vmul.f32 %v697_v45, %v569_v40  ;;  %v913_v15 = vmul.f32 %v698_v46, %v569_v40  ;;  %v915_v16 = vmul.f32 %v701_v47, %v569_v40  ;;  %v917_v17 = vmul.f32 %v702_v48, %v569_v40 }
  0x1f   : > { %v281_v18 = vadd.f32 %v901_v9, %v242_v49  ;;  %v282_v19 = vadd.f32 %v901_v9, %v243_v50  ;;  %v283_v20 = vadd.f32 %v901_v9, %v244_v51  ;;  %v284_v21 = vadd.f32 %v901_v9, %v245_v52 }
  0x20   : > { %v285_v22 = vadd.f32 %v901_v9, %v246_v53  ;;  %v286_v23 = vadd.f32 %v901_v9, %v247_v54  ;;  %v287_v24 = vadd.f32 %v901_v9, %v248_v55  ;;  %v288_v25 = vadd.f32 %v901_v9, %v249_v56 }
  0x21   : > { %v313_v26 = vmax.f32 %v281_v18, 0.0  ;;  %v314_v27 = vmax.f32 %v282_v19, 0.0  ;;  %v315_v28 = vmax.f32 %v283_v20, 0.0  ;;  %v316_v29 = vmax.f32 %v284_v21, 0.0 }
  0x22   : > { %v317_v30 = vmax.f32 %v285_v22, 0.0  ;;  %v318_v31 = vmax.f32 %v286_v23, 0.0  ;;  %v319_v32 = vmax.f32 %v287_v24, 0.0  ;;  %v320_v33 = vmax.f32 %v288_v25, 0.0 }
  0x23   : > { %v706_v34 = vpack.c.bf16 %v314_v27, %v313_v26  ;;  %v711_v35 = vpack.c.bf16 %v316_v29, %v315_v28  ;;  %v289_v36 = vadd.f32 %v901_v9, %v250_v57  ;;  %v290_v37 = vadd.f32 %v901_v9, %v251_v58 }
  0x24   : > { %v716_v38 = vpack.c.bf16 %v318_v31, %v317_v30  ;;  %v721_v39 = vpack.c.bf16 %v320_v33, %v319_v32  ;;  %v291_v40 = vadd.f32 %v901_v9, %v252_v59  ;;  %v292_v41 = vadd.f32 %v901_v9, %v253_v60 }
  0x25   : > { %707 = vst [vmem:[%s932_s24] sm:$0xff] %v706_v34   ;;  %798 = vst [vmem:[%s932_s24 + $0x8] sm:$0xff] %v711_v35   ;;  %v321_v42 = vmax.f32 %v289_v36, 0.0  ;;  %v322_v43 = vmax.f32 %v290_v37, 0.0  ;;  %v293_v44 = vadd.f32 %v901_v9, %v254_v61  ;;  %v294_v45 = vadd.f32 %v901_v9, %v255_v62 }
  0x26   : > { %799 = vst [vmem:[%s932_s24 + $0x10] sm:$0xff] %v716_v38   ;;  %800 = vst [vmem:[%s932_s24 + $0x18] sm:$0xff] %v721_v39   ;;  %v323_v46 = vmax.f32 %v291_v40, 0.0  ;;  %v324_v47 = vmax.f32 %v292_v41, 0.0  ;;  %v295_v48 = vadd.f32 %v901_v9, %v256_v63  ;;  %v296_v49 = vadd.f32 %v901_v9, %v257_v0 }
  0x27   : > { %v726_v50 = vpack.c.bf16 %v322_v43, %v321_v42  ;;  %v325_v51 = vmax.f32 %v293_v44, 0.0  ;;  %v326_v52 = vmax.f32 %v294_v45, 0.0  ;;  %v297_v53 = vadd.f32 %v901_v9, %v258_v1 }
  0x28   : > { %v731_v54 = vpack.c.bf16 %v324_v47, %v323_v46  ;;  %v327_v55 = vmax.f32 %v295_v48, 0.0  ;;  %v328_v56 = vmax.f32 %v296_v49, 0.0  ;;  %v298_v57 = vadd.f32 %v901_v9, %v259_v2 }
  0x29   : > { %801 = vst [vmem:[%s932_s24 + $0x20] sm:$0xff] %v726_v50   ;;  %v736_v58 = vpack.c.bf16 %v326_v52, %v325_v51  ;;  %v329_v59 = vmax.f32 %v297_v53, 0.0  ;;  %v299_v60 = vadd.f32 %v901_v9, %v886_v7  ;;  %v300_v61 = vadd.f32 %v901_v9, %v888_v3 }
  0x2a   : > { %802 = vst [vmem:[%s932_s24 + $0x28] sm:$0xff] %v731_v54   ;;  %v741_v62 = vpack.c.bf16 %v328_v56, %v327_v55  ;;  %v330_v63 = vmax.f32 %v298_v57, 0.0  ;;  %v301_v0 = vadd.f32 %v901_v9, %v890_v4  ;;  %v302_v1 = vadd.f32 %v901_v9, %v892_v5 }
  0x2b   : > { %803 = vst [vmem:[%s932_s24 + $0x30] sm:$0xff] %v736_v58   ;;  %v331_v2 = vmax.f32 %v299_v60, 0.0  ;;  %v332_v18 = vmax.f32 %v300_v61, 0.0  ;;  %v303_v19 = vadd.f32 %v901_v9, %v894_v6  ;;  %v304_v7 = vadd.f32 %v901_v9, %v896_v8 }
  0x2c   : > { %804 = vst [vmem:[%s932_s24 + $0x38] sm:$0xff] %v741_v62   ;;  %v746_v3 = vpack.c.bf16 %v330_v63, %v329_v59  ;;  %v333_v20 = vmax.f32 %v301_v0, 0.0  ;;  %v334_v21 = vmax.f32 %v302_v1, 0.0  ;;  %v305_v4 = vadd.f32 %v901_v9, %v903_v10 }
  0x2d   : > { %v751_v22 = vpack.c.bf16 %v332_v18, %v331_v2  ;;  %v335_v5 = vmax.f32 %v303_v19, 0.0  ;;  %v336_v23 = vmax.f32 %v304_v7, 0.0  ;;  %v306_v24 = vadd.f32 %v901_v9, %v905_v11 }
  0x2e   : > { %805 = vst [vmem:[%s932_s24 + $0x40] sm:$0xff] %v746_v3   ;;  %v756_v6 = vpack.c.bf16 %v334_v21, %v333_v20  ;;  %v337_v25 = vmax.f32 %v305_v4, 0.0  ;;  %v307_v8 = vadd.f32 %v901_v9, %v907_v12  ;;  %v308_v26 = vadd.f32 %v901_v9, %v909_v13 }
  0x2f   : > { %806 = vst [vmem:[%s932_s24 + $0x48] sm:$0xff] %v751_v22   ;;  %v761_v27 = vpack.c.bf16 %v336_v23, %v335_v5  ;;  %v338_v10 = vmax.f32 %v306_v24, 0.0  ;;  %v309_v28 = vadd.f32 %v901_v9, %v911_v14  ;;  %v310_v11 = vadd.f32 %v901_v9, %v913_v15 }
  0x30   : > { %807 = vst [vmem:[%s932_s24 + $0x50] sm:$0xff] %v756_v6   ;;  %v339_v29 = vmax.f32 %v307_v8, 0.0  ;;  %v340_v30 = vmax.f32 %v308_v26, 0.0  ;;  %v311_v12 = vadd.f32 %v901_v9, %v915_v16  ;;  %v312_v13 = vadd.f32 %v901_v9, %v917_v17 }
  0x31   : > { %808 = vst [vmem:[%s932_s24 + $0x58] sm:$0xff] %v761_v27   ;;  %v766_v31 = vpack.c.bf16 %v338_v10, %v337_v25  ;;  %v341_v32 = vmax.f32 %v309_v28, 0.0  ;;  %v342_v33 = vmax.f32 %v310_v11, 0.0 }
  0x32   : > { %v771_v14 = vpack.c.bf16 %v340_v30, %v339_v29  ;;  %v343_v34 = vmax.f32 %v311_v12, 0.0  ;;  %v344_v35 = vmax.f32 %v312_v13, 0.0 }
  0x33   : > { %809 = vst [vmem:[%s932_s24 + $0x60] sm:$0xff] %v766_v31   ;;  %v776_v15 = vpack.c.bf16 %v342_v33, %v341_v32 }
  0x34   : > { %810 = vst [vmem:[%s932_s24 + $0x68] sm:$0xff] %v771_v14   ;;  %v781_v36 = vpack.c.bf16 %v344_v35, %v343_v34 }
  0x35   : > { %811 = vst [vmem:[%s932_s24 + $0x70] sm:$0xff] %v776_v15  }
  0x36   : > { %812 = vst [vmem:[%s932_s24 + $0x78] sm:$0xff] %v781_v36  }
  0x37 PF: > { %s13_s12 = sadd.s32 1, %s827_s12  }
  0x38   : > { %p10_p4 = scmp.ge.s32.totalorder %s13_s12, 4  }
  0x3a   :  { %12 = sbr.rel (!%p10_p4) target bundleno = 1 (0x1), region = 62 }

// kernel: unet_block_forward.4
= control target key start
LH: loop header
LB: loop body
LE: loop exit
PB: predicated region body
PF: predicated region fallthrough
CT: control target
= control target key end

     0   :  { %s1997_s15 = smov 0   ;;  %s2223_s0 = inlined_call_operand.vmem [shape: bf16[2,288,12], index: 0, kind: input, shape index: {}]   ;;  %s2224_s1 = inlined_call_operand.vmem [shape: bf16[3,12,128], index: 1, kind: input, shape index: {}]   ;;  %s2225_s2 = inlined_call_operand.vmem [shape: bf16[2,256,128], index: 2, kind: output, shape index: {0}]   ;;  %s2226_s3 = inlined_call_operand.vmem [shape: f32[2,1,128], index: 3, kind: output, shape index: {1}]   ;;  %s2227_s4 = inlined_call_operand.vmem [shape: f32[2,1,128], index: 4, kind: output, shape index: {2}]  }
   0x1 LB: > { %s1502_s16 = sadd.s32 4294967295, %s1970_s15   ;;  %p1506_p0 = scmp.ge.s32.totalorder %s1970_s15, 1  ;;  %s1970_s15 = sphi %s1997_s15, %s15_s15  }
   0x2   : > { %p167_p1 = scmp.lt.s32.totalorder %s1970_s15, 3 }
   0x4   : > { %p168_p2 = pnand %p1506_p0, %p167_p1 }
   0x5   : > { %p199_p3 = scmp.lt.s32.totalorder (!%p168_p2), %s1502_s16, 1 }
   0x6   : > { %171 = sbr.rel (%p168_p2) target bundleno = 336 (0x150), region = 28 }
   0xb   : > { %v1928_v0 = vld [vmem:[%s2224_s1 + $0x8] sm:$0x3f]   ;;  %vm389_vm0 = vcmask 1045504   ;;  %v1931_v2 = vld [vmem:[%s2224_s1] sm:$0x3f]   ;;  %s2229_s16 = smov (!%p199_p3, %s1502_s16), 1 }
   0xc   : > { %1916 = vmatprep.subr.msk.bf16.mxu1 %vm389_vm0, %v1928_v0  ;;  %1915 = vmatprep.subr.msk.bf16.mxu0 %vm389_vm0, %v1928_v0  ;;  %v391_v1 = vsel %vm389_vm0, %v1928_v0, 0  ;;  %v1934_v3 = vld [vmem:[%s2224_s1 + $0x10] sm:$0x3f]   ;;  %s1919_s23 = smul.u32 144, %s2229_s16  ;;  %vm340_vm1 = vcmask 97280   ;;  %v568_v9 = vsel %vm389_vm0, %v1931_v2, 0  ;;  %s211_s7 = scalar_lea.vmem %s2226_s3, %s2229_s16 }
   0xd   : > { %1914 = vmatpush3.bf16.msra.mxu1 %v391_v1  ;;  %1812 = vmatpush3.bf16.msra.mxu0 %v391_v1  ;;  %v900_v7 = vsel %vm389_vm0, %v1934_v3, 0  ;;  %s1632_s27 = sshll.u32 %s2229_s16, 7  ;;  %s214_s10 = scalar_lea.vmem %s2227_s4, %s2229_s16 }
   0xe   : > { %1917 = vmatprep.subr.msk.bf16.mxu1 %vm389_vm0, %v1931_v2  ;;  %1918 = vmatprep.subr.msk.bf16.mxu0 %vm389_vm0, %v1934_v3  ;;  %s2025_s26 = scalar_lea.vmem %s2223_s0, %s1919_s23  ;;  %s2170_s30 = scalar_lea.vmem %s2225_s2, %s1632_s27 }
   0xf   : > { %v1929_v4 = vld [vmem:[%s2025_s26 + $0x8] sm:$0xff]   ;;  %v1932_v6 = vld [vmem:[%s2025_s26 + $0x10] sm:$0xff]   ;;  %v1935_v10 = vld [vmem:[%s2025_s26 + $0x18] sm:$0xff]  }
  0x10   : > { %v2029_v5 = vld [vmem:[%s2025_s26 + $0x48] sm:$0xff]   ;;  %1813 = vmatprep.mubr.msk.bf16.mxu0 %vm340_vm1, %v1929_v4  ;;  %v2037_v8 = vld [vmem:[%s2025_s26 + $0x50] sm:$0xff]   ;;  %v1936_v11 = vld [vmem:[%s2025_s26 + $0x58] sm:$0xff]  }
  0x11   : > { %1829 = vmatprep.mubr.msk.bf16.mxu1 %vm340_vm1, %v2029_v5  ;;  %1814 = vmatmul.mubr.msk.bf16.vlgmr.msra.gmra.mxu0 %vm340_vm1, %v1932_v6  ;;  %v1937_v12 = vld [vmem:[%s2025_s26 + $0x20] sm:$0xff]   ;;  %v1939_v14 = vld [vmem:[%s2025_s26 + $0x28] sm:$0xff]   ;;  %v1941_v16 = vld [vmem:[%s2025_s26 + $0x30] sm:$0xff]  }
  0x12   : > { %1830 = vmatmul.mubr.msk.bf16.vlgmr.msra.gmra.mxu1 %vm340_vm1, %v2037_v8  ;;  %1880 = vmatpush3.bf16.msra.mxu0 %v900_v7  ;;  %v1938_v13 = vld [vmem:[%s2025_s26 + $0x60] sm:$0xff]   ;;  %v1940_v15 = vld [vmem:[%s2025_s26 + $0x68] sm:$0xff]   ;;  %v1942_v17 = vld [vmem:[%s2025_s26 + $0x70] sm:$0xff]  }
  0x13   : > { %1846 = vmatpush3.bf16.msra.mxu1 %v568_v9  ;;  %1817 = vmatprep.mubr.msk.bf16.mxu0 %vm340_vm1, %v1935_v10  ;;  %v1943_v18 = vld [vmem:[%s2025_s26 + $0x38] sm:$0xff]   ;;  %v1945_v20 = vld [vmem:[%s2025_s26 + $0x40] sm:$0xff]   ;;  %v1948_v22 = vld [vmem:[%s2025_s26 + $0x10] sm:$0xff]  }
  0x14   : > { %1833 = vmatprep.mubr.msk.bf16.mxu1 %vm340_vm1, %v1936_v11  ;;  %v1944_v19 = vld [vmem:[%s2025_s26 + $0x78] sm:$0xff]   ;;  %v1946_v21 = vld [vmem:[%s2025_s26 + $0x80] sm:$0xff]   ;;  %v1951_v26 = vld [vmem:[%s2025_s26 + $0x28] sm:$0xff]  }
  0x15   : > { %v1947_v23 = vld [vmem:[%s2025_s26] sm:$0xff]   ;;  %v1949_v24 = vld [vmem:[%s2025_s26 + $0x18] sm:$0xff]   ;;  %v1952_v27 = vld [vmem:[%s2025_s26 + $0x30] sm:$0xff]  }
  0x16   : > { %v1950_v25 = vld [vmem:[%s2025_s26 + $0x20] sm:$0xff]   ;;  %v1953_v28 = vld [vmem:[%s2025_s26 + $0x38] sm:$0xff]   ;;  %v1955_v30 = vld [vmem:[%s2025_s26 + $0x48] sm:$0xff]  }
  0x17   : > { %v1954_v29 = vld [vmem:[%s2025_s26 + $0x40] sm:$0xff]   ;;  %v1956_v31 = vld [vmem:[%s2025_s26 + $0x50] sm:$0xff]   ;;  %v1957_v32 = vld [vmem:[%s2025_s26 + $0x58] sm:$0xff]  }
  0x18   : > { %v1958_v33 = vld [vmem:[%s2025_s26 + $0x60] sm:$0xff]   ;;  %v1959_v34 = vld [vmem:[%s2025_s26 + $0x68] sm:$0xff]   ;;  %v1960_v35 = vld [vmem:[%s2025_s26 + $0x70] sm:$0xff]  }
  0x19   : > { %1818 = vmatmul.mubr.msk.bf16.gmra.mxu0 %vm340_vm1, %v1937_v12  ;;  %v1961_v36 = vld [vmem:[%s2025_s26 + $0x78] sm:$0xff]   ;;  %v1962_v37 = vld [vmem:[%s2025_s26 + $0x80] sm:$0xff]   ;;  %v1963_v38 = vld [vmem:[%s2025_s26 + $0x88] sm:$0xff]  }
  0x1a   : > { %1834 = vmatmul.mubr.msk.bf16.gmra.mxu1 %vm340_vm1, %v1938_v13  ;;  %1821 = vmatprep.mubr.msk.bf16.mxu0 %vm340_vm1, %v1939_v14 }
  0x1b   : > { %1837 = vmatprep.mubr.msk.bf16.mxu1 %vm340_vm1, %v1940_v15 }
  0x21   : > { %1822 = vmatmul.mubr.msk.bf16.gmra.mxu0 %vm340_vm1, %v1941_v16 }
  0x22   : > { %1838 = vmatmul.mubr.msk.bf16.gmra.mxu1 %vm340_vm1, %v1942_v17  ;;  %1825 = vmatprep.mubr.msk.bf16.mxu0 %vm340_vm1, %v1943_v18 }
  0x23   : > { %1841 = vmatprep.mubr.msk.bf16.mxu1 %vm340_vm1, %v1944_v19 }
  0x29   : > { %1826 = vmatmul.mubr.msk.bf16.gmra.mxu0 %vm340_vm1, %v1945_v20 }
  0x2a   : > { %1842 = vmatmul.mubr.msk.bf16.gmra.mxu1 %vm340_vm1, %v1946_v21  ;;  %1881 = vmatprep.mubr.msk.bf16.mxu0 %vm340_vm1, %v1948_v22 }
  0x2b   : > { %1847 = vmatprep.mubr.msk.bf16.mxu1 %vm340_vm1, %v1947_v23 }
  0x31   : > { %1882 = vmatmul.mubr.msk.bf16.vlgmr.msra.gmra.mxu0 %vm340_vm1, %v1949_v24 }
  0x32   : > { %1848 = vmatmul.mubr.msk.bf16.vlgmr.msra.gmra.mxu1 %vm340_vm1, %v1929_v4  ;;  %1885 = vmatprep.mubr.msk.bf16.mxu0 %vm340_vm1, %v1950_v25 }
  0x33   : > { %1851 = vmatprep.mubr.msk.bf16.mxu1 %vm340_vm1, %v1932_v6 }
  0x39   : > { %1886 = vmatmul.mubr.msk.bf16.gmra.mxu0 %vm340_vm1, %v1951_v26 }
  0x3a   : > { %1852 = vmatmul.mubr.msk.bf16.gmra.mxu1 %vm340_vm1, %v1935_v10  ;;  %1889 = vmatprep.mubr.msk.bf16.mxu0 %vm340_vm1, %v1952_v27 }
  0x3b   : > { %1855 = vmatprep.mubr.msk.bf16.mxu1 %vm340_vm1, %v1937_v12 }
  0x41   : > { %1890 = vmatmul.mubr.msk.bf16.gmra.mxu0 %vm340_vm1, %v1953_v28 }
  0x42   : > { %1856 = vmatmul.mubr.msk.bf16.gmra.mxu1 %vm340_vm1, %v1939_v14  ;;  %1893 = vmatprep.mubr.msk.bf16.mxu0 %vm340_vm1, %v1954_v29 }
  0x43   : > { %1859 = vmatprep.mubr.msk.bf16.mxu1 %vm340_vm1, %v1941_v16 }
  0x49   : > { %1894 = vmatmul.mubr.msk.bf16.gmra.mxu0 %vm340_vm1, %v1955_v30 }
  0x4a   : > { %1860 = vmatmul.mubr.msk.bf16.gmra.mxu1 %vm340_vm1, %v1943_v18  ;;  %1897 = vmatprep.mubr.msk.bf16.mxu0 %vm340_vm1, %v1956_v31 }
  0x4b   : > { %1863 = vmatprep.mubr.msk.bf16.mxu1 %vm340_vm1, %v1945_v20 }
  0x51   : > { %1898 = vmatmul.mubr.msk.bf16.gmra.mxu0 %vm340_vm1, %v1957_v32 }
  0x52   : > { %1864 = vmatmul.mubr.msk.bf16.gmra.mxu1 %vm340_vm1, %v2029_v5  ;;  %1901 = vmatprep.mubr.msk.bf16.mxu0 %vm340_vm1, %v1958_v33 }
  0x53   : > { %1867 = vmatprep.mubr.msk.bf16.mxu1 %vm340_vm1, %v2037_v8 }
  0x59   : > { %1902 = vmatmul.mubr.msk.bf16.gmra.mxu0 %vm340_vm1, %v1959_v34 }
  0x5a   : > { %1868 = vmatmul.mubr.msk.bf16.gmra.mxu1 %vm340_vm1, %v1936_v11  ;;  %1905 = vmatprep.mubr.msk.bf16.mxu0 %vm340_vm1, %v1960_v35 }
  0x5b   : > { %1871 = vmatprep.mubr.msk.bf16.mxu1 %vm340_vm1, %v1938_v13 }
  0x61   : > { %1906 = vmatmul.mubr.msk.bf16.gmra.mxu0 %vm340_vm1, %v1961_v36 }
  0x62   : > { %1872 = vmatmul.mubr.msk.bf16.gmra.mxu1 %vm340_vm1, %v1940_v15  ;;  %1909 = vmatprep.mubr.msk.bf16.mxu0 %vm340_vm1, %v1962_v37 }
  0x63   : > { %1875 = vmatprep.mubr.msk.bf16.mxu1 %vm340_vm1, %v1942_v17 }
  0x69   : > { %1910 = vmatmul.mubr.msk.bf16.gmra.mxu0 %vm340_vm1, %v1963_v38 }
  0x6a   : > { %1876 = vmatmul.mubr.msk.bf16.gmra.mxu1 %vm340_vm1, %v1944_v19 }
  0xd1   : > { %v1815_v39 = vpop.f32.mrf.mxu0 }
  0xd2   : > { %v2118_v40 = vpop.f32.mrf.mxu1 }
  0xd3   : > { %v427_v41 = vpop.f32.mrf.mxu0 }
  0xd4   : > { %v2120_v42 = vpop.f32.mrf.mxu1 }
  0xd5   : > { %v1816_v43 = vpop.f32.mrf.mxu0 }
  0xd6   : > { %v2122_v44 = vpop.f32.mrf.mxu1 }
  0xd7   : > { %v430_v45 = vpop.f32.mrf.mxu0 }
  0xd8   : > { %v2124_v46 = vpop.f32.mrf.mxu1 }
  0xd9   : > { %v1819_v47 = vpop.f32.mrf.mxu0 }
  0xda   : > { %v2126_v48 = vpop.f32.mrf.mxu1 }
  0xdb   : > { %v443_v49 = vpop.f32.mrf.mxu0 }
  0xdc   : > { %v2128_v50 = vpop.f32.mrf.mxu1 }
  0xdd   : > { %v1820_v51 = vpop.f32.mrf.mxu0 }
  0xde   : > { %v2130_v52 = vpop.f32.mrf.mxu1 }
  0xdf   : > { %v446_v53 = vpop.f32.mrf.mxu0 }
  0xe0   : > { %v2132_v54 = vpop.f32.mrf.mxu1 }
  0xe1   : > { %v2134_v55 = vpop.f32.mrf.mxu0 }
  0xe2   : > { %v2136_v56 = vpop.f32.mrf.mxu1 }
  0xe3   : > { %v2138_v57 = vpop.f32.mrf.mxu0 }
  0xe4   : > { %v2140_v58 = vpop.f32.mrf.mxu1 }
  0xe5   : > { %v2142_v59 = vpop.f32.mrf.mxu0 }
  0xe6   : > { %v2144_v60 = vpop.f32.mrf.mxu1 }
  0xe7   : > { %v2146_v61 = vpop.f32.mrf.mxu0 }
  0xe8   : > { %v2148_v62 = vpop.f32.mrf.mxu1 }
  0xe9   : > { %v2150_v63 = vpop.f32.mrf.mxu0 }
  0xea   : > { %v2152_v0 = vpop.f32.mrf.mxu1 }
  0xeb   : > { %v2154_v1 = vpop.f32.mrf.mxu0 }
  0xec   : > { %v2156_v2 = vpop.f32.mrf.mxu1 }
  0xed   : > { %v2158_v3 = vpop.f32.mrf.mxu0 }
  0xee   : > { %v2160_v4 = vpop.f32.mrf.mxu1 }
  0xef   : > { %v2162_v5 = vpop.f32.mrf.mxu0 }
  0xf0   : > { %v2164_v6 = vpop.f32.mrf.mxu1 }
  0xf1   : > { %v1883_v7 = vpop.f32.mrf.mxu0 }
  0xf2   : > { %v1849_v8 = vpop.f32.mrf.mxu1 }
  0xf3   : > { %v936_v9 = vpop.f32.mrf.mxu0  ;;  %v613_v11 = vadd.f32 %v1849_v8, %v1815_v39 }
  0xf4   : > { %v604_v10 = vpop.f32.mrf.mxu1 }
  0xf5   : > { %v1884_v12 = vpop.f32.mrf.mxu0  ;;  %v605_v14 = vadd.f32 %v604_v10, %v427_v41  ;;  %v1065_v18 = vadd.f32 %v1883_v7, %v613_v11 }
  0xf6   : > { %v1850_v13 = vpop.f32.mrf.mxu1 }
  0xf7   : > { %v616_v15 = vadd.f32 %v1850_v13, %v1816_v43  ;;  %v939_v16 = vpop.f32.mrf.mxu0  ;;  %v1063_v23 = vadd.f32 %v936_v9, %v605_v14 }
  0xf8   : > { %v607_v17 = vpop.f32.mrf.mxu1 }
  0xf9   : > { %v1066_v19 = vadd.f32 %v1884_v12, %v616_v15  ;;  %v608_v20 = vadd.f32 %v607_v17, %v430_v45  ;;  %v1887_v21 = vpop.f32.mrf.mxu0 }
  0xfa   : > { %v1853_v22 = vpop.f32.mrf.mxu1 }
  0xfb   : > { %v1096_v24 = vpack.c.bf16 %v1066_v19, %v1065_v18  ;;  %v1064_v25 = vadd.f32 %v939_v16, %v608_v20  ;;  %v952_v26 = vpop.f32.mrf.mxu0  ;;  %v629_v31 = vadd.f32 %v1853_v22, %v1819_v47 }
  0xfc   : > { %v620_v27 = vpop.f32.mrf.mxu1 }
  0xfd   : > { %1745 = vst [vmem:[%s2170_s30 + $0x8] sm:$0xff] %v1096_v24   ;;  %v1095_v28 = vpack.c.bf16 %v1064_v25, %v1063_v23  ;;  %v1888_v29 = vpop.f32.mrf.mxu0  ;;  %v1257_v30 = vunpack.c.l.bf16 %v1096_v24  ;;  %v621_v35 = vadd.f32 %v620_v27, %v443_v49  ;;  %v1258_v8 = vunpack.c.h.bf16 %v1096_v24 }
  0xfe   : > { %v1854_v32 = vpop.f32.mrf.mxu1  ;;  %v1069_v10 = vadd.f32 %v1887_v21, %v629_v31 }
  0xff   : > { %1669 = vst [vmem:[%s2170_s30] sm:$0xff] %v1095_v28   ;;  %v1255_v33 = vunpack.c.l.bf16 %v1095_v28  ;;  %v1256_v34 = vunpack.c.h.bf16 %v1095_v28  ;;  %v955_v36 = vpop.f32.mrf.mxu0  ;;  %v632_v37 = vadd.f32 %v1854_v32, %v1820_v51  ;;  %v1327_v9 = vmul.f32 %v1257_v30, %v1257_v30 }
 0x100   : > { %v623_v38 = vpop.f32.mrf.mxu1  ;;  %v1067_v14 = vadd.f32 %v952_v26, %v621_v35  ;;  %v1328_v20 = vmul.f32 %v1258_v8, %v1258_v8 }
 0x101   : > { %v1287_v39 = vadd.f32 %v1256_v34, %v1255_v33  ;;  %v1325_v41 = vmul.f32 %v1255_v33, %v1255_v33  ;;  %v1326_v43 = vmul.f32 %v1256_v34, %v1256_v34  ;;  %v624_v45 = vadd.f32 %v623_v38, %v446_v53  ;;  %v1891_v7 = vpop.f32.mrf.mxu0 }
 0x102   : > { %v1070_v11 = vadd.f32 %v1888_v29, %v632_v37  ;;  %v1857_v47 = vpop.f32.mrf.mxu1 }
 0x103   : > { %v1288_v12 = vadd.f32 %v1287_v39, %v1257_v30  ;;  %v1357_v13 = vadd.f32 %v1326_v43, %v1325_v41  ;;  %v1068_v15 = vadd.f32 %v955_v36, %v624_v45  ;;  %v968_v49 = vpop.f32.mrf.mxu0  ;;  %v645_v51 = vadd.f32 %v1857_v47, %v2134_v55 }
 0x104   : > { %v1098_v16 = vpack.c.bf16 %v1070_v11, %v1069_v10  ;;  %v636_v17 = vpop.f32.mrf.mxu1 }
 0x105   : > { %v1358_v18 = vadd.f32 %v1357_v13, %v1327_v9  ;;  %v1097_v19 = vpack.c.bf16 %v1068_v15, %v1067_v14  ;;  %v1892_v53 = vpop.f32.mrf.mxu0  ;;  %v1289_v24 = vadd.f32 %v1288_v12, %v1258_v8  ;;  %v1073_v28 = vadd.f32 %v1891_v7, %v645_v51 }
 0x106   : > { %1747 = vst [vmem:[%s2170_s30 + $0x18] sm:$0xff] %v1098_v16   ;;  %v1858_v22 = vpop.f32.mrf.mxu1  ;;  %v1261_v26 = vunpack.c.l.bf16 %v1098_v16  ;;  %v637_v29 = vadd.f32 %v636_v17, %v2138_v57  ;;  %v1262_v35 = vunpack.c.h.bf16 %v1098_v16 }
 0x107   : > { %1746 = vst [vmem:[%s2170_s30 + $0x10] sm:$0xff] %v1097_v19   ;;  %v1259_v21 = vunpack.c.l.bf16 %v1097_v19  ;;  %v1260_v23 = vunpack.c.h.bf16 %v1097_v19  ;;  %v648_v25 = vadd.f32 %v1858_v22, %v2142_v59  ;;  %v971_v27 = vpop.f32.mrf.mxu0  ;;  %v1359_v32 = vadd.f32 %v1358_v18, %v1328_v20 }
 0x108   : > { %v639_v30 = vpop.f32.mrf.mxu1  ;;  %v1071_v45 = vadd.f32 %v968_v49, %v637_v29  ;;  %v1331_v8 = vmul.f32 %v1261_v26, %v1261_v26 }
 0x109   : > { %v1290_v55 = vadd.f32 %v1289_v24, %v1259_v21  ;;  %v1329_v31 = vmul.f32 %v1259_v21, %v1259_v21  ;;  %v1074_v33 = vadd.f32 %v1892_v53, %v648_v25  ;;  %v1895_v34 = vpop.f32.mrf.mxu0  ;;  %v640_v36 = vadd.f32 %v639_v30, %v2146_v61 }
 0x10a   : > { %v1861_v37 = vpop.f32.mrf.mxu1  ;;  %v1330_v39 = vmul.f32 %v1260_v23, %v1260_v23  ;;  %v1332_v61 = vmul.f32 %v1262_v35, %v1262_v35 }
 0x10b   : > { %v1291_v38 = vadd.f32 %v1290_v55, %v1260_v23  ;;  %v1360_v41 = vadd.f32 %v1359_v32, %v1329_v31  ;;  %v1100_v59 = vpack.c.bf16 %v1074_v33, %v1073_v28  ;;  %v984_v43 = vpop.f32.mrf.mxu0  ;;  %v1072_v7 = vadd.f32 %v971_v27, %v640_v36 }
 0x10c   : > { %v652_v57 = vpop.f32.mrf.mxu1  ;;  %v661_v12 = vadd.f32 %v1861_v37, %v2150_v63 }
 0x10d   : > { %v1292_v9 = vadd.f32 %v1291_v38, %v1261_v26  ;;  %v1361_v10 = vadd.f32 %v1360_v41, %v1330_v39  ;;  %1749 = vst [vmem:[%s2170_s30 + $0x28] sm:$0xff] %v1100_v59   ;;  %v1896_v11 = vpop.f32.mrf.mxu0  ;;  %v1099_v47 = vpack.c.bf16 %v1072_v7, %v1071_v45  ;;  %v653_v16 = vadd.f32 %v652_v57, %v2154_v1 }
 0x10e   : > { %v1862_v13 = vpop.f32.mrf.mxu1  ;;  %v1265_v53 = vunpack.c.l.bf16 %v1100_v59  ;;  %v1077_v24 = vadd.f32 %v1895_v34, %v661_v12  ;;  %v1266_v26 = vunpack.c.h.bf16 %v1100_v59 }
 0x10f   : > { %v1362_v14 = vadd.f32 %v1361_v10, %v1331_v8  ;;  %v1293_v15 = vadd.f32 %v1292_v9, %v1262_v35  ;;  %v987_v51 = vpop.f32.mrf.mxu0  ;;  %1748 = vst [vmem:[%s2170_s30 + $0x20] sm:$0xff] %v1099_v47   ;;  %v1263_v49 = vunpack.c.l.bf16 %v1099_v47  ;;  %v1264_v17 = vunpack.c.h.bf16 %v1099_v47 }
 0x110   : > { %v664_v18 = vadd.f32 %v1862_v13, %v2158_v3  ;;  %v655_v19 = vpop.f32.mrf.mxu1  ;;  %v1075_v1 = vadd.f32 %v984_v43, %v653_v16  ;;  %v1335_v36 = vmul.f32 %v1265_v53, %v1265_v53  ;;  %v1336_v45 = vmul.f32 %v1266_v26, %v1266_v26 }
 0x111   : > { %v1363_v20 = vadd.f32 %v1362_v14, %v1332_v61  ;;  %v656_v22 = vadd.f32 %v655_v19, %v2162_v5  ;;  %v1899_v21 = vpop.f32.mrf.mxu0  ;;  %v1294_v23 = vadd.f32 %v1293_v15, %v1263_v49  ;;  %v1333_v63 = vmul.f32 %v1263_v49, %v1263_v49 }
 0x112   : > { %v1078_v25 = vadd.f32 %v1896_v11, %v664_v18  ;;  %v1865_v27 = vpop.f32.mrf.mxu1  ;;  %v1334_v55 = vmul.f32 %v1264_v17, %v1264_v17 }
 0x113   : > { %v1076_v28 = vadd.f32 %v987_v51, %v656_v22  ;;  %v1000_v29 = vpop.f32.mrf.mxu0  ;;  %v1295_v30 = vadd.f32 %v1294_v23, %v1264_v17  ;;  %v1364_v3 = vadd.f32 %v1363_v20, %v1333_v63  ;;  %v677_v5 = vadd.f32 %v1865_v27, %v2118_v40 }
 0x114   : > { %v1102_v31 = vpack.c.bf16 %v1078_v25, %v1077_v24  ;;  %v668_v32 = vpop.f32.mrf.mxu1 }
 0x115   : > { %v1101_v33 = vpack.c.bf16 %v1076_v28, %v1075_v1  ;;  %v1900_v35 = vpop.f32.mrf.mxu0  ;;  %v1296_v37 = vadd.f32 %v1295_v30, %v1265_v53  ;;  %v1365_v34 = vadd.f32 %v1364_v3, %v1334_v55  ;;  %v669_v41 = vadd.f32 %v668_v32, %v2120_v42 }
 0x116   : > { %1751 = vst [vmem:[%s2170_s30 + $0x38] sm:$0xff] %v1102_v31   ;;  %v1866_v38 = vpop.f32.mrf.mxu1  ;;  %v1081_v40 = vadd.f32 %v1899_v21, %v677_v5  ;;  %v1269_v13 = vunpack.c.l.bf16 %v1102_v31  ;;  %v1270_v42 = vunpack.c.h.bf16 %v1102_v31 }
 0x117   : > { %1750 = vst [vmem:[%s2170_s30 + $0x30] sm:$0xff] %v1101_v33   ;;  %v1267_v39 = vunpack.c.l.bf16 %v1101_v33  ;;  %v680_v59 = vadd.f32 %v1866_v38, %v2122_v44  ;;  %v1003_v43 = vpop.f32.mrf.mxu0  ;;  %v1366_v7 = vadd.f32 %v1365_v34, %v1335_v36  ;;  %v1268_v57 = vunpack.c.h.bf16 %v1101_v33 }
 0x118   : > { %v1297_v8 = vadd.f32 %v1296_v37, %v1266_v26  ;;  %v671_v9 = vpop.f32.mrf.mxu1  ;;  %v1079_v16 = vadd.f32 %v1000_v29, %v669_v41  ;;  %v1339_v21 = vmul.f32 %v1269_v13, %v1269_v13  ;;  %v1340_v25 = vmul.f32 %v1270_v42, %v1270_v42 }
 0x119   : > { %v1337_v10 = vmul.f32 %v1267_v39, %v1267_v39  ;;  %v1082_v11 = vadd.f32 %v1900_v35, %v680_v59  ;;  %v672_v47 = vadd.f32 %v671_v9, %v2124_v46  ;;  %v1903_v12 = vpop.f32.mrf.mxu0  ;;  %v1367_v14 = vadd.f32 %v1366_v7, %v1336_v45 }
 0x11a   : > { %v1298_v61 = vadd.f32 %v1297_v8, %v1267_v39  ;;  %v1869_v15 = vpop.f32.mrf.mxu1  ;;  %v1338_v18 = vmul.f32 %v1268_v57, %v1268_v57 }
 0x11b   : > { %v1104_v44 = vpack.c.bf16 %v1082_v11, %v1081_v40  ;;  %v1080_v51 = vadd.f32 %v1003_v43, %v672_v47  ;;  %v1016_v49 = vpop.f32.mrf.mxu0  ;;  %v1368_v19 = vadd.f32 %v1367_v14, %v1337_v10  ;;  %v693_v63 = vadd.f32 %v1869_v15, %v2126_v48 }
 0x11c   : > { %v1299_v17 = vadd.f32 %v1298_v61, %v1268_v57  ;;  %v684_v53 = vpop.f32.mrf.mxu1 }
 0x11d   : > { %1753 = vst [vmem:[%s2170_s30 + $0x48] sm:$0xff] %v1104_v44   ;;  %v1103_v20 = vpack.c.bf16 %v1080_v51, %v1079_v16  ;;  %v1904_v22 = vpop.f32.mrf.mxu0  ;;  %v1369_v23 = vadd.f32 %v1368_v19, %v1338_v18  ;;  %v685_v26 = vadd.f32 %v684_v53, %v2128_v50  ;;  %v1273_v31 = vunpack.c.l.bf16 %v1104_v44 }
 0x11e   : > { %v1300_v46 = vadd.f32 %v1299_v17, %v1269_v13  ;;  %v1870_v24 = vpop.f32.mrf.mxu1  ;;  %v1085_v36 = vadd.f32 %v1903_v12, %v693_v63  ;;  %v1274_v38 = vunpack.c.h.bf16 %v1104_v44 }
 0x11f   : > { %1752 = vst [vmem:[%s2170_s30 + $0x40] sm:$0xff] %v1103_v20   ;;  %v1271_v27 = vunpack.c.l.bf16 %v1103_v20  ;;  %v1019_v1 = vpop.f32.mrf.mxu0  ;;  %v1370_v28 = vadd.f32 %v1369_v23, %v1339_v21  ;;  %v1272_v29 = vunpack.c.h.bf16 %v1103_v20  ;;  %v696_v55 = vadd.f32 %v1870_v24, %v2130_v52 }
 0x120   : > { %v1301_v30 = vadd.f32 %v1300_v46, %v1270_v42  ;;  %v687_v3 = vpop.f32.mrf.mxu1  ;;  %v1083_v50 = vadd.f32 %v1016_v49, %v685_v26  ;;  %v1343_v9 = vmul.f32 %v1273_v31, %v1273_v31  ;;  %v1344_v14 = vmul.f32 %v1274_v38, %v1274_v38 }
 0x121   : > { %v1341_v32 = vmul.f32 %v1271_v27, %v1271_v27  ;;  %v688_v33 = vadd.f32 %v687_v3, %v2132_v54  ;;  %v1907_v5 = vpop.f32.mrf.mxu0  ;;  %v1371_v48 = vadd.f32 %v1370_v28, %v1340_v25  ;;  %v1086_v37 = vadd.f32 %v1904_v22, %v696_v55 }
 0x122   : > { %v1302_v35 = vadd.f32 %v1301_v30, %v1271_v27  ;;  %v1873_v34 = vpop.f32.mrf.mxu1  ;;  %v1342_v43 = vmul.f32 %v1272_v29, %v1272_v29 }
 0x123   : > { %v1084_v39 = vadd.f32 %v1019_v1, %v688_v33  ;;  %v1032_v41 = vpop.f32.mrf.mxu0  ;;  %v1372_v52 = vadd.f32 %v1371_v48, %v1341_v32  ;;  %v1106_v45 = vpack.c.bf16 %v1086_v37, %v1085_v36  ;;  %v709_v54 = vadd.f32 %v1873_v34, %v2136_v56 }
 0x124   : > { %v1303_v59 = vadd.f32 %v1302_v35, %v1272_v29  ;;  %v700_v7 = vpop.f32.mrf.mxu1 }
 0x125   : > { %v1105_v57 = vpack.c.bf16 %v1084_v39, %v1083_v50  ;;  %v1908_v8 = vpop.f32.mrf.mxu0  ;;  %v1373_v40 = vadd.f32 %v1372_v52, %v1342_v43  ;;  %1755 = vst [vmem:[%s2170_s30 + $0x58] sm:$0xff] %v1106_v45   ;;  %v701_v12 = vadd.f32 %v700_v7, %v2140_v58  ;;  %v1089_v56 = vadd.f32 %v1907_v5, %v709_v54 }
 0x126   : > { %v1304_v10 = vadd.f32 %v1303_v59, %v1273_v31  ;;  %v1874_v11 = vpop.f32.mrf.mxu1  ;;  %v1277_v19 = vunpack.c.l.bf16 %v1106_v45  ;;  %v1278_v58 = vunpack.c.h.bf16 %v1106_v45 }
 0x127   : > { %1754 = vst [vmem:[%s2170_s30 + $0x50] sm:$0xff] %v1105_v57   ;;  %v1275_v47 = vunpack.c.l.bf16 %v1105_v57  ;;  %v712_v13 = vadd.f32 %v1874_v11, %v2144_v60  ;;  %v1035_v61 = vpop.f32.mrf.mxu0  ;;  %v1374_v15 = vadd.f32 %v1373_v40, %v1343_v9  ;;  %v1276_v42 = vunpack.c.h.bf16 %v1105_v57 }
 0x128   : > { %v1305_v16 = vadd.f32 %v1304_v10, %v1274_v38  ;;  %v703_v44 = vpop.f32.mrf.mxu1  ;;  %v1087_v21 = vadd.f32 %v1032_v41, %v701_v12  ;;  %v1347_v1 = vmul.f32 %v1277_v19, %v1277_v19  ;;  %v1348_v3 = vmul.f32 %v1278_v58, %v1278_v58 }
 0x129   : > { %v1345_v51 = vmul.f32 %v1275_v47, %v1275_v47  ;;  %v1090_v49 = vadd.f32 %v1908_v8, %v712_v13  ;;  %v704_v17 = vadd.f32 %v703_v44, %v2148_v62  ;;  %v1911_v18 = vpop.f32.mrf.mxu0  ;;  %v1375_v20 = vadd.f32 %v1374_v15, %v1344_v14 }
 0x12a   : > { %v1306_v53 = vadd.f32 %v1305_v16, %v1275_v47  ;;  %v1877_v22 = vpop.f32.mrf.mxu1  ;;  %v1346_v24 = vmul.f32 %v1276_v42, %v1276_v42 }
 0x12b   : > { %v1108_v60 = vpack.c.bf16 %v1090_v49, %v1089_v56  ;;  %v1088_v46 = vadd.f32 %v1035_v61, %v704_v17  ;;  %v1048_v23 = vpop.f32.mrf.mxu0  ;;  %v1376_v25 = vadd.f32 %v1375_v20, %v1345_v51  ;;  %v725_v29 = vadd.f32 %v1877_v22, %v2152_v0 }
 0x12c   : > { %v1307_v63 = vadd.f32 %v1306_v53, %v1276_v42  ;;  %v716_v27 = vpop.f32.mrf.mxu1 }
 0x12d   : > { %1757 = vst [vmem:[%s2170_s30 + $0x68] sm:$0xff] %v1108_v60   ;;  %v1107_v26 = vpack.c.bf16 %v1088_v46, %v1087_v21  ;;  %v1377_v62 = vadd.f32 %v1376_v25, %v1346_v24  ;;  %v1912_v55 = vpop.f32.mrf.mxu0  ;;  %v717_v32 = vadd.f32 %v716_v27, %v2156_v2  ;;  %v1281_v37 = vunpack.c.l.bf16 %v1108_v60 }
 0x12e   : > { %v1308_v28 = vadd.f32 %v1307_v63, %v1277_v19  ;;  %v1878_v30 = vpop.f32.mrf.mxu1  ;;  %v1093_v39 = vadd.f32 %v1911_v18, %v725_v29  ;;  %v1282_v43 = vunpack.c.h.bf16 %v1108_v60 }
 0x12f   : > { %1756 = vst [vmem:[%s2170_s30 + $0x60] sm:$0xff] %v1107_v26   ;;  %v1279_v31 = vunpack.c.l.bf16 %v1107_v26  ;;  %v1378_v33 = vadd.f32 %v1377_v62, %v1347_v1  ;;  %v1280_v5 = vunpack.c.h.bf16 %v1107_v26  ;;  %v728_v48 = vadd.f32 %v1878_v30, %v2160_v4  ;;  %v1051_v59 = vpop.f32.mrf.mxu0 }
 0x130   : > { %v1309_v35 = vadd.f32 %v1308_v28, %v1278_v58  ;;  %v719_v36 = vpop.f32.mrf.mxu1  ;;  %v1091_v52 = vadd.f32 %v1048_v23, %v717_v32  ;;  %v1351_v8 = vmul.f32 %v1281_v37, %v1281_v37  ;;  %v1352_v40 = vmul.f32 %v1282_v43, %v1282_v43 }
 0x131   : > { %v1349_v34 = vmul.f32 %v1279_v31, %v1279_v31  ;;  %v720_v38 = vadd.f32 %v719_v36, %v2164_v6  ;;  %v1379_v0 = vadd.f32 %v1378_v33, %v1348_v3  ;;  %v1094_v41 = vadd.f32 %v1912_v55, %v728_v48 }
 0x132   : > { %v1310_v50 = vadd.f32 %v1309_v35, %v1279_v31  ;;  %v1350_v7 = vmul.f32 %v1280_v5, %v1280_v5 }
 0x133   : > { %v1092_v2 = vadd.f32 %v1051_v59, %v720_v38  ;;  %v1380_v57 = vadd.f32 %v1379_v0, %v1349_v34  ;;  %v1110_v54 = vpack.c.bf16 %v1094_v41, %v1093_v39 }
 0x134   : > { %v1311_v45 = vadd.f32 %v1310_v50, %v1280_v5 }
 0x135   : > { %v1109_v4 = vpack.c.bf16 %v1092_v2, %v1091_v52  ;;  %v1381_v10 = vadd.f32 %v1380_v57, %v1350_v7  ;;  %1759 = vst [vmem:[%s2170_s30 + $0x78] sm:$0xff] %v1110_v54   ;;  %v1285_v61 = vunpack.c.l.bf16 %v1110_v54  ;;  %v1286_v42 = vunpack.c.h.bf16 %v1110_v54 }
 0x136   : > { %v1312_v9 = vadd.f32 %v1311_v45, %v1281_v37 }
 0x137   : > { %1758 = vst [vmem:[%s2170_s30 + $0x70] sm:$0xff] %v1109_v4   ;;  %v1283_v6 = vunpack.c.l.bf16 %v1109_v4  ;;  %v1382_v11 = vadd.f32 %v1381_v10, %v1351_v8  ;;  %v1284_v47 = vunpack.c.h.bf16 %v1109_v4  ;;  %v1355_v56 = vmul.f32 %v1285_v61, %v1285_v61 }
 0x138   : > { %v1313_v12 = vadd.f32 %v1312_v9, %v1282_v43  ;;  %v1356_v18 = vmul.f32 %v1286_v42, %v1286_v42 }
 0x139   : > { %v1353_v13 = vmul.f32 %v1283_v6, %v1283_v6  ;;  %v1383_v15 = vadd.f32 %v1382_v11, %v1352_v40  ;;  %v1354_v44 = vmul.f32 %v1284_v47, %v1284_v47 }
 0x13a   : > { %v1314_v14 = vadd.f32 %v1313_v12, %v1283_v6 }
 0x13b   : > { %v1384_v51 = vadd.f32 %v1383_v15, %v1353_v13 }
 0x13c   : > { %v1315_v16 = vadd.f32 %v1314_v14, %v1284_v47 }
 0x13d   : > { %v1385_v17 = vadd.f32 %v1384_v51, %v1354_v44 }
 0x13e   : > { %v1316_v49 = vadd.f32 %v1315_v16, %v1285_v61 }
 0x13f   : > { %v1386_v53 = vadd.f32 %v1385_v17, %v1355_v56 }
 0x140   : > { %v1317_v19 = vadd.f32 %v1316_v49, %v1286_v42 }
 0x141   : > { %v1387_v22 = vadd.f32 %v1386_v53, %v1356_v18 }
 0x142   : > { %v1318_v20 = vrot.slane %v1317_v19, 4 }
 0x143   : > { %v1388_v21 = vrot.slane %v1387_v22, 4 }
 0x144   : > { %v1319_v58 = vadd.f32 %v1318_v20, %v1317_v19 }
 0x145   : > { %v1389_v46 = vadd.f32 %v1388_v21, %v1387_v22 }
 0x146   : > { %v1320_v60 = vrot.slane %v1319_v58, 2 }
 0x147   : > { %v1390_v63 = vrot.slane %v1389_v46, 2 }
 0x148   : > { %v1321_v23 = vadd.f32 %v1320_v60, %v1319_v58 }
 0x149   : > { %v1391_v25 = vadd.f32 %v1390_v63, %v1389_v46 }
 0x14a   : > { %v1322_v24 = vrot.slane %v1321_v23, 1 }
 0x14b   : > { %v1392_v26 = vrot.slane %v1391_v25, 1 }
 0x14c   : > { %v1323_v27 = vadd.f32 %v1322_v24, %v1321_v23 }
 0x14d   : > { %v1393_v1 = vadd.f32 %v1392_v26, %v1391_v25 }
 0x14e   : > { %1395 = vst [vmem:[%s211_s7] sm:$0x1] %v1323_v27 }
 0x14f   : > { %1396 = vst [vmem:[%s214_s10] sm:$0x1] %v1393_v1 }
 0x150 PF: > { %s15_s15 = sadd.s32 1, %s1970_s15  }
 0x151   : > { %p12_p4 = scmp.ge.s32.totalorder %s15_s15, 4  }
 0x153   :  { %14 = sbr.rel (!%p12_p4) target bundleno = 1 (0x1), region = 84 }

// kernel: unet_block_forward.6
= control target key start
LH: loop header
LB: loop body
LE: loop exit
PB: predicated region body
PF: predicated region fallthrough
CT: control target
= control target key end

     0   :  { %s2031_s15 = smov 0   ;;  %s2270_s0 = inlined_call_operand.vmem [shape: bf16[2,288,24], index: 0, kind: input, shape index: {}]   ;;  %s2271_s1 = inlined_call_operand.vmem [shape: bf16[3,24,128], index: 1, kind: input, shape index: {}]   ;;  %s2272_s2 = inlined_call_operand.vmem [shape: bf16[2,256,128], index: 2, kind: output, shape index: {0}]   ;;  %s2273_s3 = inlined_call_operand.vmem [shape: f32[2,1,128], index: 3, kind: output, shape index: {1}]   ;;  %s2274_s4 = inlined_call_operand.vmem [shape: f32[2,1,128], index: 4, kind: output, shape index: {2}]  }
   0x1 LB: > { %s1517_s16 = sadd.s32 4294967295, %s2004_s15   ;;  %p1521_p0 = scmp.ge.s32.totalorder %s2004_s15, 1  ;;  %s2004_s15 = sphi %s2031_s15, %s15_s15  }
   0x2   : > { %p167_p1 = scmp.lt.s32.totalorder %s2004_s15, 3 }
   0x4   : > { %p168_p2 = pnand %p1521_p0, %p167_p1 }
   0x5   : > { %p199_p3 = scmp.lt.s32.totalorder (!%p168_p2), %s1517_s16, 1 }
   0x6   : > { %171 = sbr.rel (%p168_p2) target bundleno = 338 (0x152), region = 28 }
   0xb   : > { %v1959_v0 = vld [vmem:[%s2271_s1 + $0x14] ss:$0 sps:$4 sm:$0xff]   ;;  %vm395_vm0 = vcmask 1043456   ;;  %v1960_v1 = vld [vmem:[%s2271_s1 + $0xc] sm:$0xff]   ;;  %s2276_s16 = smov (!%p199_p3, %s1517_s16), 1  ;;  %vm346_vm1 = vcmask 195584  }
   0xc   : > { %1946 = vmatprep.subr.msk.bf16.mxu0 %vm395_vm0, %v1959_v0  ;;  %1947 = vmatprep.subr.msk.bf16.mxu1 %vm395_vm0, %v1959_v0  ;;  %v397_v2 = vsel %vm395_vm0, %v1959_v0, 0  ;;  %v1965_v3 = vld [vmem:[%s2271_s1 + $0x8] ss:$0 sps:$4 sm:$0xff]   ;;  %v1966_v4 = vld [vmem:[%s2271_s1 + $0x20] ss:$0 sps:$4 sm:$0xff]   ;;  %s1950_s25 = smul.u32 144, %s2276_s16  ;;  %s211_s13 = scalar_lea.vmem %s2273_s3, %s2276_s16 }
   0xd   : > { %1835 = vmatpush3.bf16.msra.mxu0 %v397_v2  ;;  %1944 = vmatpush3.bf16.msra.mxu1 %v397_v2  ;;  %v1975_v7 = vld [vmem:[%s2271_s1] sm:$0xff]   ;;  %v915_v9 = vsel %vm395_vm0, %v1966_v4, 0  ;;  %v1976_v10 = vld [vmem:[%s2271_s1 + $0x18] sm:$0xff]   ;;  %v578_v12 = vsel %vm395_vm0, %v1965_v3, 0  ;;  %s1652_s7 = sshll.u32 %s2276_s16, 7  ;;  %s214_s18 = scalar_lea.vmem %s2274_s4, %s2276_s16 }
   0xe   : > { %1836 = vmatprep.subr.bf16.mxu0 %v1960_v1  ;;  %1943 = vmatprep.subr.bf16.mxu1 %v1960_v1  ;;  %s2060_s28 = scalar_lea.vmem %s2270_s0, %s1950_s25  ;;  %s2217_s10 = scalar_lea.vmem %s2272_s2, %s1652_s7 }
   0xf   : > { %v1961_v5 = vld [vmem:[%s2060_s28 + $0x8] sm:$0xff]   ;;  %v1963_v8 = vld [vmem:[%s2060_s28 + $0x10] sm:$0xff]   ;;  %v1967_v13 = vld [vmem:[%s2060_s28 + $0x18] sm:$0xff]  }
  0x10   : > { %v2066_v6 = vld [vmem:[%s2060_s28 + $0x48] sm:$0xff]   ;;  %1838 = vmatprep.mubr.msk.bf16.mxu0 %vm346_vm1, %v1961_v5  ;;  %v2080_v11 = vld [vmem:[%s2060_s28 + $0x50] sm:$0xff]   ;;  %v2088_v14 = vld [vmem:[%s2060_s28 + $0x58] sm:$0xff]  }
  0x11   : > { %1837 = vmatpush3.bf16.msra.mxu0 %v1960_v1  ;;  %1945 = vmatpush3.bf16.msra.mxu1 %v1960_v1  ;;  %v1969_v15 = vld [vmem:[%s2060_s28 + $0x20] sm:$0xff]   ;;  %v1971_v17 = vld [vmem:[%s2060_s28 + $0x28] sm:$0xff]   ;;  %v1973_v19 = vld [vmem:[%s2060_s28 + $0x30] sm:$0xff]  }
  0x12   : > { %1948 = vmatprep.subr.msk.bf16.mxu1 %vm395_vm0, %v1965_v3  ;;  %1949 = vmatprep.subr.msk.bf16.mxu0 %vm395_vm0, %v1966_v4  ;;  %v1970_v16 = vld [vmem:[%s2060_s28 + $0x60] sm:$0xff]   ;;  %v1972_v18 = vld [vmem:[%s2060_s28 + $0x68] sm:$0xff]   ;;  %v1974_v20 = vld [vmem:[%s2060_s28 + $0x70] sm:$0xff]  }
  0x13   : > { %1854 = vmatprep.mubr.msk.bf16.mxu1 %vm346_vm1, %v2066_v6  ;;  %v1977_v21 = vld [vmem:[%s2060_s28 + $0x38] sm:$0xff]   ;;  %v1979_v23 = vld [vmem:[%s2060_s28 + $0x40] sm:$0xff]   ;;  %v1982_v25 = vld [vmem:[%s2060_s28 + $0x10] sm:$0xff]  }
  0x14   : > { %1839 = vmatmul.mubr.msk.bf16.vlgmr.msra.gmra.mxu0 %vm346_vm1, %v1963_v8  ;;  %1855 = vmatmul.mubr.msk.bf16.vlgmr.msra.gmra.mxu1 %vm346_vm1, %v2080_v11  ;;  %v1978_v22 = vld [vmem:[%s2060_s28 + $0x78] sm:$0xff]   ;;  %v1980_v24 = vld [vmem:[%s2060_s28 + $0x80] sm:$0xff]   ;;  %v1985_v29 = vld [vmem:[%s2060_s28 + $0x28] sm:$0xff]  }
  0x15   : > { %1907 = vmatpush3.bf16.msra.mxu0 %v915_v9  ;;  %1871 = vmatpush3.bf16.msra.mxu1 %v578_v12  ;;  %v1981_v26 = vld [vmem:[%s2060_s28] sm:$0xff]   ;;  %v1983_v27 = vld [vmem:[%s2060_s28 + $0x18] sm:$0xff]   ;;  %v1986_v30 = vld [vmem:[%s2060_s28 + $0x30] sm:$0xff]  }
  0x16   : > { %1842 = vmatprep.mubr.msk.bf16.mxu0 %vm346_vm1, %v1967_v13  ;;  %1858 = vmatprep.mubr.msk.bf16.mxu1 %vm346_vm1, %v2088_v14  ;;  %v1984_v28 = vld [vmem:[%s2060_s28 + $0x20] sm:$0xff]   ;;  %v1987_v31 = vld [vmem:[%s2060_s28 + $0x38] sm:$0xff]   ;;  %v1989_v33 = vld [vmem:[%s2060_s28 + $0x48] sm:$0xff]  }
  0x17   : > { %1872 = vmatprep.subr.bf16.mxu1 %v1975_v7  ;;  %1908 = vmatprep.subr.bf16.mxu0 %v1976_v10  ;;  %v1988_v32 = vld [vmem:[%s2060_s28 + $0x40] sm:$0xff]   ;;  %v1990_v34 = vld [vmem:[%s2060_s28 + $0x50] sm:$0xff]   ;;  %v1991_v35 = vld [vmem:[%s2060_s28 + $0x58] sm:$0xff]  }
  0x18   : > { %v1992_v36 = vld [vmem:[%s2060_s28 + $0x60] sm:$0xff]   ;;  %v1993_v37 = vld [vmem:[%s2060_s28 + $0x68] sm:$0xff]   ;;  %v1994_v38 = vld [vmem:[%s2060_s28 + $0x70] sm:$0xff]  }
  0x19   : > { %1909 = vmatpush3.bf16.msra.mxu0 %v1976_v10  ;;  %1873 = vmatpush3.bf16.msra.mxu1 %v1975_v7  ;;  %v1995_v39 = vld [vmem:[%s2060_s28 + $0x78] sm:$0xff]   ;;  %v1996_v40 = vld [vmem:[%s2060_s28 + $0x80] sm:$0xff]   ;;  %v1997_v41 = vld [vmem:[%s2060_s28 + $0x88] sm:$0xff]  }
  0x1c   : > { %1843 = vmatmul.mubr.msk.bf16.gmra.mxu0 %vm346_vm1, %v1969_v15  ;;  %1859 = vmatmul.mubr.msk.bf16.gmra.mxu1 %vm346_vm1, %v1970_v16 }
  0x1d   : > { %1846 = vmatprep.mubr.msk.bf16.mxu0 %vm346_vm1, %v1971_v17  ;;  %1862 = vmatprep.mubr.msk.bf16.mxu1 %vm346_vm1, %v1972_v18 }
  0x24   : > { %1847 = vmatmul.mubr.msk.bf16.gmra.mxu0 %vm346_vm1, %v1973_v19  ;;  %1863 = vmatmul.mubr.msk.bf16.gmra.mxu1 %vm346_vm1, %v1974_v20 }
  0x25   : > { %1850 = vmatprep.mubr.msk.bf16.mxu0 %vm346_vm1, %v1977_v21  ;;  %1866 = vmatprep.mubr.msk.bf16.mxu1 %vm346_vm1, %v1978_v22 }
  0x2c   : > { %1851 = vmatmul.mubr.msk.bf16.gmra.mxu0 %vm346_vm1, %v1979_v23  ;;  %1867 = vmatmul.mubr.msk.bf16.gmra.mxu1 %vm346_vm1, %v1980_v24 }
  0x2d   : > { %1910 = vmatprep.mubr.msk.bf16.mxu0 %vm346_vm1, %v1982_v25  ;;  %1874 = vmatprep.mubr.msk.bf16.mxu1 %vm346_vm1, %v1981_v26 }
  0x34   : > { %1911 = vmatmul.mubr.msk.bf16.vlgmr.msra.gmra.mxu0 %vm346_vm1, %v1983_v27  ;;  %1875 = vmatmul.mubr.msk.bf16.vlgmr.msra.gmra.mxu1 %vm346_vm1, %v1961_v5 }
  0x35   : > { %1914 = vmatprep.mubr.msk.bf16.mxu0 %vm346_vm1, %v1984_v28  ;;  %1878 = vmatprep.mubr.msk.bf16.mxu1 %vm346_vm1, %v1963_v8 }
  0x3c   : > { %1915 = vmatmul.mubr.msk.bf16.gmra.mxu0 %vm346_vm1, %v1985_v29  ;;  %1879 = vmatmul.mubr.msk.bf16.gmra.mxu1 %vm346_vm1, %v1967_v13 }
  0x3d   : > { %1918 = vmatprep.mubr.msk.bf16.mxu0 %vm346_vm1, %v1986_v30  ;;  %1882 = vmatprep.mubr.msk.bf16.mxu1 %vm346_vm1, %v1969_v15 }
  0x44   : > { %1919 = vmatmul.mubr.msk.bf16.gmra.mxu0 %vm346_vm1, %v1987_v31  ;;  %1883 = vmatmul.mubr.msk.bf16.gmra.mxu1 %vm346_vm1, %v1971_v17 }
  0x45   : > { %1922 = vmatprep.mubr.msk.bf16.mxu0 %vm346_vm1, %v1988_v32  ;;  %1886 = vmatprep.mubr.msk.bf16.mxu1 %vm346_vm1, %v1973_v19 }
  0x4c   : > { %1923 = vmatmul.mubr.msk.bf16.gmra.mxu0 %vm346_vm1, %v1989_v33  ;;  %1887 = vmatmul.mubr.msk.bf16.gmra.mxu1 %vm346_vm1, %v1977_v21 }
  0x4d   : > { %1926 = vmatprep.mubr.msk.bf16.mxu0 %vm346_vm1, %v1990_v34  ;;  %1890 = vmatprep.mubr.msk.bf16.mxu1 %vm346_vm1, %v1979_v23 }
  0x54   : > { %1927 = vmatmul.mubr.msk.bf16.gmra.mxu0 %vm346_vm1, %v1991_v35  ;;  %1891 = vmatmul.mubr.msk.bf16.gmra.mxu1 %vm346_vm1, %v2066_v6 }
  0x55   : > { %1930 = vmatprep.mubr.msk.bf16.mxu0 %vm346_vm1, %v1992_v36  ;;  %1894 = vmatprep.mubr.msk.bf16.mxu1 %vm346_vm1, %v2080_v11 }
  0x5c   : > { %1931 = vmatmul.mubr.msk.bf16.gmra.mxu0 %vm346_vm1, %v1993_v37  ;;  %1895 = vmatmul.mubr.msk.bf16.gmra.mxu1 %vm346_vm1, %v2088_v14 }
  0x5d   : > { %1934 = vmatprep.mubr.msk.bf16.mxu0 %vm346_vm1, %v1994_v38  ;;  %1898 = vmatprep.mubr.msk.bf16.mxu1 %vm346_vm1, %v1970_v16 }
  0x64   : > { %1935 = vmatmul.mubr.msk.bf16.gmra.mxu0 %vm346_vm1, %v1995_v39  ;;  %1899 = vmatmul.mubr.msk.bf16.gmra.mxu1 %vm346_vm1, %v1972_v18 }
  0x65   : > { %1938 = vmatprep.mubr.msk.bf16.mxu0 %vm346_vm1, %v1996_v40  ;;  %1902 = vmatprep.mubr.msk.bf16.mxu1 %vm346_vm1, %v1974_v20 }
  0x6c   : > { %1939 = vmatmul.mubr.msk.bf16.gmra.mxu0 %vm346_vm1, %v1997_v41  ;;  %1903 = vmatmul.mubr.msk.bf16.gmra.mxu1 %vm346_vm1, %v1978_v22 }
  0xd4   : > { %v1840_v42 = vpop.f32.mrf.mxu0  ;;  %v2165_v43 = vpop.f32.mrf.mxu1 }
  0xd6   : > { %v433_v44 = vpop.f32.mrf.mxu0  ;;  %v2167_v45 = vpop.f32.mrf.mxu1 }
  0xd8   : > { %v1841_v46 = vpop.f32.mrf.mxu0  ;;  %v2169_v47 = vpop.f32.mrf.mxu1 }
  0xda   : > { %v436_v48 = vpop.f32.mrf.mxu0  ;;  %v2171_v49 = vpop.f32.mrf.mxu1 }
  0xdc   : > { %v1844_v50 = vpop.f32.mrf.mxu0  ;;  %v2173_v51 = vpop.f32.mrf.mxu1 }
  0xde   : > { %v449_v52 = vpop.f32.mrf.mxu0  ;;  %v2175_v53 = vpop.f32.mrf.mxu1 }
  0xe0   : > { %v1845_v54 = vpop.f32.mrf.mxu0  ;;  %v2177_v55 = vpop.f32.mrf.mxu1 }
  0xe2   : > { %v452_v56 = vpop.f32.mrf.mxu0  ;;  %v2179_v57 = vpop.f32.mrf.mxu1 }
  0xe4   : > { %v2181_v58 = vpop.f32.mrf.mxu0  ;;  %v2183_v59 = vpop.f32.mrf.mxu1 }
  0xe6   : > { %v2185_v60 = vpop.f32.mrf.mxu0  ;;  %v2187_v61 = vpop.f32.mrf.mxu1 }
  0xe8   : > { %v2189_v62 = vpop.f32.mrf.mxu0  ;;  %v2191_v63 = vpop.f32.mrf.mxu1 }
  0xea   : > { %v2193_v0 = vpop.f32.mrf.mxu0  ;;  %v2195_v1 = vpop.f32.mrf.mxu1 }
  0xec   : > { %v2197_v2 = vpop.f32.mrf.mxu0  ;;  %v2199_v3 = vpop.f32.mrf.mxu1 }
  0xee   : > { %v2201_v4 = vpop.f32.mrf.mxu0  ;;  %v2203_v5 = vpop.f32.mrf.mxu1 }
  0xf0   : > { %v2205_v6 = vpop.f32.mrf.mxu0  ;;  %v2207_v7 = vpop.f32.mrf.mxu1 }
  0xf2   : > { %v2209_v8 = vpop.f32.mrf.mxu0  ;;  %v2211_v9 = vpop.f32.mrf.mxu1 }
  0xf4   : > { %v1912_v10 = vpop.f32.mrf.mxu0  ;;  %v1876_v11 = vpop.f32.mrf.mxu1 }
  0xf5   : > { %v623_v14 = vadd.f32 %v1876_v11, %v1840_v42 }
  0xf6   : > { %v951_v12 = vpop.f32.mrf.mxu0  ;;  %v614_v13 = vpop.f32.mrf.mxu1 }
  0xf7   : > { %v615_v17 = vadd.f32 %v614_v13, %v433_v44  ;;  %v1080_v21 = vadd.f32 %v1912_v10, %v623_v14 }
  0xf8   : > { %v1913_v15 = vpop.f32.mrf.mxu0  ;;  %v1877_v16 = vpop.f32.mrf.mxu1 }
  0xf9   : > { %v626_v18 = vadd.f32 %v1877_v16, %v1841_v46  ;;  %v1078_v26 = vadd.f32 %v951_v12, %v615_v17 }
  0xfa   : > { %v954_v19 = vpop.f32.mrf.mxu0  ;;  %v617_v20 = vpop.f32.mrf.mxu1 }
  0xfb   : > { %v1081_v22 = vadd.f32 %v1913_v15, %v626_v18  ;;  %v618_v23 = vadd.f32 %v617_v20, %v436_v48 }
  0xfc   : > { %v1916_v24 = vpop.f32.mrf.mxu0  ;;  %v1880_v25 = vpop.f32.mrf.mxu1 }
  0xfd   : > { %v1111_v27 = vpack.c.bf16 %v1081_v22, %v1080_v21  ;;  %v1079_v28 = vadd.f32 %v954_v19, %v618_v23  ;;  %v639_v34 = vadd.f32 %v1880_v25, %v1844_v50 }
  0xfe   : > { %v967_v29 = vpop.f32.mrf.mxu0  ;;  %v630_v30 = vpop.f32.mrf.mxu1 }
  0xff   : > { %1765 = vst [vmem:[%s2217_s10 + $0x8] sm:$0xff] %v1111_v27   ;;  %v1110_v31 = vpack.c.bf16 %v1079_v28, %v1078_v26  ;;  %v1272_v33 = vunpack.c.l.bf16 %v1111_v27  ;;  %v631_v38 = vadd.f32 %v630_v30, %v449_v52  ;;  %v1273_v11 = vunpack.c.h.bf16 %v1111_v27 }
 0x100   : > { %v1917_v32 = vpop.f32.mrf.mxu0  ;;  %v1881_v35 = vpop.f32.mrf.mxu1  ;;  %v1084_v13 = vadd.f32 %v1916_v24, %v639_v34 }
 0x101   : > { %1689 = vst [vmem:[%s2217_s10] sm:$0xff] %v1110_v31   ;;  %v1270_v36 = vunpack.c.l.bf16 %v1110_v31  ;;  %v1271_v37 = vunpack.c.h.bf16 %v1110_v31  ;;  %v642_v40 = vadd.f32 %v1881_v35, %v1845_v54  ;;  %v1342_v12 = vmul.f32 %v1272_v33, %v1272_v33 }
 0x102   : > { %v970_v39 = vpop.f32.mrf.mxu0  ;;  %v633_v41 = vpop.f32.mrf.mxu1  ;;  %v1082_v17 = vadd.f32 %v967_v29, %v631_v38  ;;  %v1343_v23 = vmul.f32 %v1273_v11, %v1273_v11 }
 0x103   : > { %v1302_v42 = vadd.f32 %v1271_v37, %v1270_v36  ;;  %v1340_v44 = vmul.f32 %v1270_v36, %v1270_v36  ;;  %v1341_v46 = vmul.f32 %v1271_v37, %v1271_v37  ;;  %v634_v48 = vadd.f32 %v633_v41, %v452_v56 }
 0x104   : > { %v1920_v10 = vpop.f32.mrf.mxu0  ;;  %v1085_v14 = vadd.f32 %v1917_v32, %v642_v40  ;;  %v1884_v50 = vpop.f32.mrf.mxu1 }
 0x105   : > { %v1303_v15 = vadd.f32 %v1302_v42, %v1272_v33  ;;  %v1372_v16 = vadd.f32 %v1341_v46, %v1340_v44  ;;  %v1083_v18 = vadd.f32 %v970_v39, %v634_v48  ;;  %v655_v54 = vadd.f32 %v1884_v50, %v2181_v58 }
 0x106   : > { %v983_v52 = vpop.f32.mrf.mxu0  ;;  %v1113_v19 = vpack.c.bf16 %v1085_v14, %v1084_v13  ;;  %v646_v20 = vpop.f32.mrf.mxu1 }
 0x107   : > { %v1373_v21 = vadd.f32 %v1372_v16, %v1342_v12  ;;  %v1112_v22 = vpack.c.bf16 %v1083_v18, %v1082_v17  ;;  %v1304_v27 = vadd.f32 %v1303_v15, %v1273_v11  ;;  %v1088_v31 = vadd.f32 %v1920_v10, %v655_v54 }
 0x108   : > { %v1921_v56 = vpop.f32.mrf.mxu0  ;;  %1767 = vst [vmem:[%s2217_s10 + $0x18] sm:$0xff] %v1113_v19   ;;  %v1885_v25 = vpop.f32.mrf.mxu1  ;;  %v1276_v29 = vunpack.c.l.bf16 %v1113_v19  ;;  %v647_v32 = vadd.f32 %v646_v20, %v2185_v60  ;;  %v1277_v38 = vunpack.c.h.bf16 %v1113_v19 }
 0x109   : > { %1766 = vst [vmem:[%s2217_s10 + $0x10] sm:$0xff] %v1112_v22   ;;  %v1274_v24 = vunpack.c.l.bf16 %v1112_v22  ;;  %v1275_v26 = vunpack.c.h.bf16 %v1112_v22  ;;  %v658_v28 = vadd.f32 %v1885_v25, %v2189_v62  ;;  %v1374_v35 = vadd.f32 %v1373_v21, %v1343_v23 }
 0x10a   : > { %v986_v30 = vpop.f32.mrf.mxu0  ;;  %v649_v33 = vpop.f32.mrf.mxu1  ;;  %v1086_v48 = vadd.f32 %v983_v52, %v647_v32  ;;  %v1346_v11 = vmul.f32 %v1276_v29, %v1276_v29 }
 0x10b   : > { %v1305_v58 = vadd.f32 %v1304_v27, %v1274_v24  ;;  %v1344_v34 = vmul.f32 %v1274_v24, %v1274_v24  ;;  %v1089_v36 = vadd.f32 %v1921_v56, %v658_v28  ;;  %v650_v39 = vadd.f32 %v649_v33, %v2193_v0 }
 0x10c   : > { %v1924_v37 = vpop.f32.mrf.mxu0  ;;  %v1888_v40 = vpop.f32.mrf.mxu1  ;;  %v1345_v42 = vmul.f32 %v1275_v26, %v1275_v26  ;;  %v1347_v0 = vmul.f32 %v1277_v38, %v1277_v38 }
 0x10d   : > { %v1306_v41 = vadd.f32 %v1305_v58, %v1275_v26  ;;  %v1375_v44 = vadd.f32 %v1374_v35, %v1344_v34  ;;  %v1115_v62 = vpack.c.bf16 %v1089_v36, %v1088_v31  ;;  %v1087_v10 = vadd.f32 %v986_v30, %v650_v39 }
 0x10e   : > { %v999_v46 = vpop.f32.mrf.mxu0  ;;  %v662_v60 = vpop.f32.mrf.mxu1  ;;  %v671_v15 = vadd.f32 %v1888_v40, %v2197_v2 }
 0x10f   : > { %v1307_v12 = vadd.f32 %v1306_v41, %v1276_v29  ;;  %v1376_v13 = vadd.f32 %v1375_v44, %v1345_v42  ;;  %1769 = vst [vmem:[%s2217_s10 + $0x28] sm:$0xff] %v1115_v62   ;;  %v1114_v50 = vpack.c.bf16 %v1087_v10, %v1086_v48  ;;  %v663_v19 = vadd.f32 %v662_v60, %v2201_v4 }
 0x110   : > { %v1925_v14 = vpop.f32.mrf.mxu0  ;;  %v1889_v16 = vpop.f32.mrf.mxu1  ;;  %v1280_v56 = vunpack.c.l.bf16 %v1115_v62  ;;  %v1092_v27 = vadd.f32 %v1924_v37, %v671_v15  ;;  %v1281_v29 = vunpack.c.h.bf16 %v1115_v62 }
 0x111   : > { %v1377_v17 = vadd.f32 %v1376_v13, %v1346_v11  ;;  %v1308_v18 = vadd.f32 %v1307_v12, %v1277_v38  ;;  %1768 = vst [vmem:[%s2217_s10 + $0x20] sm:$0xff] %v1114_v50   ;;  %v1278_v52 = vunpack.c.l.bf16 %v1114_v50  ;;  %v1279_v20 = vunpack.c.h.bf16 %v1114_v50 }
 0x112   : > { %v1002_v54 = vpop.f32.mrf.mxu0  ;;  %v674_v21 = vadd.f32 %v1889_v16, %v2205_v6  ;;  %v665_v22 = vpop.f32.mrf.mxu1  ;;  %v1090_v4 = vadd.f32 %v999_v46, %v663_v19  ;;  %v1350_v39 = vmul.f32 %v1280_v56, %v1280_v56  ;;  %v1351_v48 = vmul.f32 %v1281_v29, %v1281_v29 }
 0x113   : > { %v1378_v23 = vadd.f32 %v1377_v17, %v1347_v0  ;;  %v666_v25 = vadd.f32 %v665_v22, %v2209_v8  ;;  %v1309_v26 = vadd.f32 %v1308_v18, %v1278_v52  ;;  %v1348_v2 = vmul.f32 %v1278_v52, %v1278_v52 }
 0x114   : > { %v1928_v24 = vpop.f32.mrf.mxu0  ;;  %v1093_v28 = vadd.f32 %v1925_v14, %v674_v21  ;;  %v1892_v30 = vpop.f32.mrf.mxu1  ;;  %v1349_v58 = vmul.f32 %v1279_v20, %v1279_v20 }
 0x115   : > { %v1091_v31 = vadd.f32 %v1002_v54, %v666_v25  ;;  %v1310_v33 = vadd.f32 %v1309_v26, %v1279_v20  ;;  %v1379_v6 = vadd.f32 %v1378_v23, %v1348_v2  ;;  %v687_v8 = vadd.f32 %v1892_v30, %v2165_v43 }
 0x116   : > { %v1015_v32 = vpop.f32.mrf.mxu0  ;;  %v1117_v34 = vpack.c.bf16 %v1093_v28, %v1092_v27  ;;  %v678_v35 = vpop.f32.mrf.mxu1 }
 0x117   : > { %v1116_v36 = vpack.c.bf16 %v1091_v31, %v1090_v4  ;;  %v1311_v40 = vadd.f32 %v1310_v33, %v1280_v56  ;;  %v1380_v37 = vadd.f32 %v1379_v6, %v1349_v58  ;;  %v679_v44 = vadd.f32 %v678_v35, %v2167_v45 }
 0x118   : > { %v1929_v38 = vpop.f32.mrf.mxu0  ;;  %1771 = vst [vmem:[%s2217_s10 + $0x38] sm:$0xff] %v1117_v34   ;;  %v1893_v41 = vpop.f32.mrf.mxu1  ;;  %v1096_v43 = vadd.f32 %v1928_v24, %v687_v8  ;;  %v1284_v16 = vunpack.c.l.bf16 %v1117_v34  ;;  %v1285_v45 = vunpack.c.h.bf16 %v1117_v34 }
 0x119   : > { %1770 = vst [vmem:[%s2217_s10 + $0x30] sm:$0xff] %v1116_v36   ;;  %v1282_v42 = vunpack.c.l.bf16 %v1116_v36  ;;  %v690_v62 = vadd.f32 %v1893_v41, %v2169_v47  ;;  %v1381_v10 = vadd.f32 %v1380_v37, %v1350_v39  ;;  %v1283_v60 = vunpack.c.h.bf16 %v1116_v36 }
 0x11a   : > { %v1018_v46 = vpop.f32.mrf.mxu0  ;;  %v1312_v11 = vadd.f32 %v1311_v40, %v1281_v29  ;;  %v681_v12 = vpop.f32.mrf.mxu1  ;;  %v1094_v19 = vadd.f32 %v1015_v32, %v679_v44  ;;  %v1354_v24 = vmul.f32 %v1284_v16, %v1284_v16  ;;  %v1355_v28 = vmul.f32 %v1285_v45, %v1285_v45 }
 0x11b   : > { %v1352_v13 = vmul.f32 %v1282_v42, %v1282_v42  ;;  %v1097_v14 = vadd.f32 %v1929_v38, %v690_v62  ;;  %v682_v50 = vadd.f32 %v681_v12, %v2171_v49  ;;  %v1382_v17 = vadd.f32 %v1381_v10, %v1351_v48 }
 0x11c   : > { %v1932_v15 = vpop.f32.mrf.mxu0  ;;  %v1313_v0 = vadd.f32 %v1312_v11, %v1282_v42  ;;  %v1896_v18 = vpop.f32.mrf.mxu1  ;;  %v1353_v21 = vmul.f32 %v1283_v60, %v1283_v60 }
 0x11d   : > { %v1119_v47 = vpack.c.bf16 %v1097_v14, %v1096_v43  ;;  %v1095_v54 = vadd.f32 %v1018_v46, %v682_v50  ;;  %v1383_v22 = vadd.f32 %v1382_v17, %v1352_v13  ;;  %v703_v2 = vadd.f32 %v1896_v18, %v2173_v51 }
 0x11e   : > { %v1031_v52 = vpop.f32.mrf.mxu0  ;;  %v1314_v20 = vadd.f32 %v1313_v0, %v1283_v60  ;;  %v694_v56 = vpop.f32.mrf.mxu1 }
 0x11f   : > { %1773 = vst [vmem:[%s2217_s10 + $0x48] sm:$0xff] %v1119_v47   ;;  %v1118_v23 = vpack.c.bf16 %v1095_v54, %v1094_v19  ;;  %v1384_v26 = vadd.f32 %v1383_v22, %v1353_v21  ;;  %v695_v29 = vadd.f32 %v694_v56, %v2175_v53  ;;  %v1288_v34 = vunpack.c.l.bf16 %v1119_v47 }
 0x120   : > { %v1933_v25 = vpop.f32.mrf.mxu0  ;;  %v1315_v49 = vadd.f32 %v1314_v20, %v1284_v16  ;;  %v1897_v27 = vpop.f32.mrf.mxu1  ;;  %v1100_v39 = vadd.f32 %v1932_v15, %v703_v2  ;;  %v1289_v41 = vunpack.c.h.bf16 %v1119_v47 }
 0x121   : > { %1772 = vst [vmem:[%s2217_s10 + $0x40] sm:$0xff] %v1118_v23   ;;  %v1286_v30 = vunpack.c.l.bf16 %v1118_v23  ;;  %v1385_v31 = vadd.f32 %v1384_v26, %v1354_v24  ;;  %v1287_v32 = vunpack.c.h.bf16 %v1118_v23  ;;  %v706_v58 = vadd.f32 %v1897_v27, %v2177_v55 }
 0x122   : > { %v1034_v4 = vpop.f32.mrf.mxu0  ;;  %v1316_v33 = vadd.f32 %v1315_v49, %v1285_v45  ;;  %v697_v6 = vpop.f32.mrf.mxu1  ;;  %v1098_v53 = vadd.f32 %v1031_v52, %v695_v29  ;;  %v1358_v12 = vmul.f32 %v1288_v34, %v1288_v34  ;;  %v1359_v17 = vmul.f32 %v1289_v41, %v1289_v41 }
 0x123   : > { %v1356_v35 = vmul.f32 %v1286_v30, %v1286_v30  ;;  %v698_v36 = vadd.f32 %v697_v6, %v2179_v57  ;;  %v1386_v51 = vadd.f32 %v1385_v31, %v1355_v28  ;;  %v1101_v40 = vadd.f32 %v1933_v25, %v706_v58 }
 0x124   : > { %v1936_v8 = vpop.f32.mrf.mxu0  ;;  %v1317_v38 = vadd.f32 %v1316_v33, %v1286_v30  ;;  %v1900_v37 = vpop.f32.mrf.mxu1  ;;  %v1357_v46 = vmul.f32 %v1287_v32, %v1287_v32 }
 0x125   : > { %v1099_v42 = vadd.f32 %v1034_v4, %v698_v36  ;;  %v1387_v55 = vadd.f32 %v1386_v51, %v1356_v35  ;;  %v1121_v48 = vpack.c.bf16 %v1101_v40, %v1100_v39  ;;  %v719_v57 = vadd.f32 %v1900_v37, %v2183_v59 }
 0x126   : > { %v1047_v44 = vpop.f32.mrf.mxu0  ;;  %v1318_v62 = vadd.f32 %v1317_v38, %v1287_v32  ;;  %v710_v10 = vpop.f32.mrf.mxu1 }
 0x127   : > { %v1120_v60 = vpack.c.bf16 %v1099_v42, %v1098_v53  ;;  %v1388_v43 = vadd.f32 %v1387_v55, %v1357_v46  ;;  %1775 = vst [vmem:[%s2217_s10 + $0x58] sm:$0xff] %v1121_v48   ;;  %v711_v15 = vadd.f32 %v710_v10, %v2187_v61  ;;  %v1104_v59 = vadd.f32 %v1936_v8, %v719_v57 }
 0x128   : > { %v1937_v11 = vpop.f32.mrf.mxu0  ;;  %v1319_v13 = vadd.f32 %v1318_v62, %v1288_v34  ;;  %v1901_v14 = vpop.f32.mrf.mxu1  ;;  %v1292_v22 = vunpack.c.l.bf16 %v1121_v48  ;;  %v1293_v61 = vunpack.c.h.bf16 %v1121_v48 }
 0x129   : > { %1774 = vst [vmem:[%s2217_s10 + $0x50] sm:$0xff] %v1120_v60   ;;  %v1290_v50 = vunpack.c.l.bf16 %v1120_v60  ;;  %v722_v16 = vadd.f32 %v1901_v14, %v2191_v63  ;;  %v1389_v18 = vadd.f32 %v1388_v43, %v1358_v12  ;;  %v1291_v45 = vunpack.c.h.bf16 %v1120_v60 }
 0x12a   : > { %v1050_v0 = vpop.f32.mrf.mxu0  ;;  %v1320_v19 = vadd.f32 %v1319_v13, %v1289_v41  ;;  %v713_v47 = vpop.f32.mrf.mxu1  ;;  %v1102_v24 = vadd.f32 %v1047_v44, %v711_v15  ;;  %v1362_v4 = vmul.f32 %v1292_v22, %v1292_v22  ;;  %v1363_v6 = vmul.f32 %v1293_v61, %v1293_v61 }
 0x12b   : > { %v1360_v54 = vmul.f32 %v1290_v50, %v1290_v50  ;;  %v1105_v52 = vadd.f32 %v1937_v11, %v722_v16  ;;  %v714_v20 = vadd.f32 %v713_v47, %v2195_v1  ;;  %v1390_v23 = vadd.f32 %v1389_v18, %v1359_v17 }
 0x12c   : > { %v1940_v21 = vpop.f32.mrf.mxu0  ;;  %v1321_v56 = vadd.f32 %v1320_v19, %v1290_v50  ;;  %v1904_v25 = vpop.f32.mrf.mxu1  ;;  %v1361_v27 = vmul.f32 %v1291_v45, %v1291_v45 }
 0x12d   : > { %v1123_v63 = vpack.c.bf16 %v1105_v52, %v1104_v59  ;;  %v1103_v49 = vadd.f32 %v1050_v0, %v714_v20  ;;  %v1391_v28 = vadd.f32 %v1390_v23, %v1360_v54  ;;  %v735_v32 = vadd.f32 %v1904_v25, %v2199_v3 }
 0x12e   : > { %v1063_v26 = vpop.f32.mrf.mxu0  ;;  %v1322_v2 = vadd.f32 %v1321_v56, %v1291_v45  ;;  %v726_v30 = vpop.f32.mrf.mxu1 }
 0x12f   : > { %1777 = vst [vmem:[%s2217_s10 + $0x68] sm:$0xff] %v1123_v63   ;;  %v1122_v29 = vpack.c.bf16 %v1103_v49, %v1102_v24  ;;  %v1392_v1 = vadd.f32 %v1391_v28, %v1361_v27  ;;  %v727_v35 = vadd.f32 %v726_v30, %v2203_v5  ;;  %v1296_v40 = vunpack.c.l.bf16 %v1123_v63 }
 0x130   : > { %v1323_v31 = vadd.f32 %v1322_v2, %v1292_v22  ;;  %v1905_v33 = vpop.f32.mrf.mxu1  ;;  %v1941_v58 = vpop.f32.mrf.mxu0  ;;  %v1108_v42 = vadd.f32 %v1940_v21, %v735_v32  ;;  %v1297_v46 = vunpack.c.h.bf16 %v1123_v63 }
 0x131   : > { %1776 = vst [vmem:[%s2217_s10 + $0x60] sm:$0xff] %v1122_v29   ;;  %v1294_v34 = vunpack.c.l.bf16 %v1122_v29  ;;  %v1393_v36 = vadd.f32 %v1392_v1, %v1362_v4  ;;  %v1295_v8 = vunpack.c.h.bf16 %v1122_v29  ;;  %v738_v51 = vadd.f32 %v1905_v33, %v2207_v7 }
 0x132   : > { %v1324_v38 = vadd.f32 %v1323_v31, %v1293_v61  ;;  %v729_v39 = vpop.f32.mrf.mxu1  ;;  %v1066_v62 = vpop.f32.mrf.mxu0  ;;  %v1106_v55 = vadd.f32 %v1063_v26, %v727_v35  ;;  %v1366_v11 = vmul.f32 %v1296_v40, %v1296_v40  ;;  %v1367_v43 = vmul.f32 %v1297_v46, %v1297_v46 }
 0x133   : > { %v1364_v37 = vmul.f32 %v1294_v34, %v1294_v34  ;;  %v730_v41 = vadd.f32 %v729_v39, %v2211_v9  ;;  %v1394_v3 = vadd.f32 %v1393_v36, %v1363_v6  ;;  %v1109_v44 = vadd.f32 %v1941_v58, %v738_v51 }
 0x134   : > { %v1325_v53 = vadd.f32 %v1324_v38, %v1294_v34  ;;  %v1365_v10 = vmul.f32 %v1295_v8, %v1295_v8 }
 0x135   : > { %v1107_v5 = vadd.f32 %v1066_v62, %v730_v41  ;;  %v1395_v60 = vadd.f32 %v1394_v3, %v1364_v37  ;;  %v1125_v57 = vpack.c.bf16 %v1109_v44, %v1108_v42 }
 0x136   : > { %v1326_v48 = vadd.f32 %v1325_v53, %v1295_v8 }
 0x137   : > { %v1124_v7 = vpack.c.bf16 %v1107_v5, %v1106_v55  ;;  %v1396_v13 = vadd.f32 %v1395_v60, %v1365_v10  ;;  %1779 = vst [vmem:[%s2217_s10 + $0x78] sm:$0xff] %v1125_v57   ;;  %v1300_v0 = vunpack.c.l.bf16 %v1125_v57  ;;  %v1301_v45 = vunpack.c.h.bf16 %v1125_v57 }
 0x138   : > { %v1327_v12 = vadd.f32 %v1326_v48, %v1296_v40 }
 0x139   : > { %1778 = vst [vmem:[%s2217_s10 + $0x70] sm:$0xff] %v1124_v7   ;;  %v1298_v9 = vunpack.c.l.bf16 %v1124_v7  ;;  %v1397_v14 = vadd.f32 %v1396_v13, %v1366_v11  ;;  %v1299_v50 = vunpack.c.h.bf16 %v1124_v7  ;;  %v1370_v59 = vmul.f32 %v1300_v0, %v1300_v0 }
 0x13a   : > { %v1328_v15 = vadd.f32 %v1327_v12, %v1297_v46  ;;  %v1371_v21 = vmul.f32 %v1301_v45, %v1301_v45 }
 0x13b   : > { %v1368_v16 = vmul.f32 %v1298_v9, %v1298_v9  ;;  %v1398_v18 = vadd.f32 %v1397_v14, %v1367_v43  ;;  %v1369_v47 = vmul.f32 %v1299_v50, %v1299_v50 }
 0x13c   : > { %v1329_v17 = vadd.f32 %v1328_v15, %v1298_v9 }
 0x13d   : > { %v1399_v54 = vadd.f32 %v1398_v18, %v1368_v16 }
 0x13e   : > { %v1330_v19 = vadd.f32 %v1329_v17, %v1299_v50 }
 0x13f   : > { %v1400_v20 = vadd.f32 %v1399_v54, %v1369_v47 }
 0x140   : > { %v1331_v52 = vadd.f32 %v1330_v19, %v1300_v0 }
 0x141   : > { %v1401_v56 = vadd.f32 %v1400_v20, %v1370_v59 }
 0x142   : > { %v1332_v22 = vadd.f32 %v1331_v52, %v1301_v45 }
 0x143   : > { %v1402_v25 = vadd.f32 %v1401_v56, %v1371_v21 }
 0x144   : > { %v1333_v23 = vrot.slane %v1332_v22, 4 }
 0x145   : > { %v1403_v24 = vrot.slane %v1402_v25, 4 }
 0x146   : > { %v1334_v61 = vadd.f32 %v1333_v23, %v1332_v22 }
 0x147   : > { %v1404_v49 = vadd.f32 %v1403_v24, %v1402_v25 }
 0x148   : > { %v1335_v63 = vrot.slane %v1334_v61, 2 }
 0x149   : > { %v1405_v2 = vrot.slane %v1404_v49, 2 }
 0x14a   : > { %v1336_v26 = vadd.f32 %v1335_v63, %v1334_v61 }
 0x14b   : > { %v1406_v28 = vadd.f32 %v1405_v2, %v1404_v49 }
 0x14c   : > { %v1337_v27 = vrot.slane %v1336_v26, 1 }
 0x14d   : > { %v1407_v29 = vrot.slane %v1406_v28, 1 }
 0x14e   : > { %v1338_v30 = vadd.f32 %v1337_v27, %v1336_v26 }
 0x14f   : > { %v1408_v4 = vadd.f32 %v1407_v29, %v1406_v28 }
 0x150   : > { %1410 = vst [vmem:[%s211_s13] sm:$0x1] %v1338_v30 }
 0x151   : > { %1411 = vst [vmem:[%s214_s18] sm:$0x1] %v1408_v4 }
 0x152 PF: > { %s15_s15 = sadd.s32 1, %s2004_s15  }
 0x153   : > { %p12_p4 = scmp.ge.s32.totalorder %s15_s15, 4  }
 0x155   :  { %14 = sbr.rel (!%p12_p4) target bundleno = 1 (0x1), region = 84 }

</bundles_post_ra>
